<compile_context>
chip_gen: v5e
topology: v5e:2x2
jax: 0.10.0
libtpu: 0.0.40
codegen_flags: <defaults>
</compile_context>

<pallas_src>
import functools

import jax
import jax.numpy as jnp
import numpy as np
from jax import lax
from jax.experimental import pallas as pl
from jax.experimental.pallas import tpu as pltpu

# ---- Mamba2 hyper-parameters (FBMambaBlock defaults) ------------------------
D_MODEL = 128
D_STATE = 64
D_CONV = 4
EXPAND = 2
HEADDIM = 32
D_INNER = EXPAND * D_MODEL            # 256
NHEADS = D_INNER // HEADDIM           # 8
CONV_DIM = D_INNER + 2 * D_STATE      # 384
D_IN_PROJ = 2 * D_INNER + 2 * D_STATE + NHEADS   # 648
PROJ_PAD = 768                        # 648 padded up to a multiple of 128
EPS = 1e-5


def _silu(x):
    return x * jax.nn.sigmoid(x)


def _softplus(x):
    return jnp.maximum(x, 0.0) + jnp.log(1.0 + jnp.exp(-jnp.abs(x)))


def _exp_dtype_for_device():
    """bf16 EUP exists on v6e/v7x; keep transcendentals f32 on v5e and older."""
    try:
        kind = jax.devices()[0].device_kind.lower()
    except Exception:
        return jnp.float32
    if "v6" in kind or "v7" in kind or "tpu7" in kind:
        return jnp.bfloat16
    return jnp.float32


# ---------------------------- Pallas kernel ---------------------------------
def fb_mamba2_kernel(u_ref, w_in_ref, cw_ref, cb_ref, dtb_ref, A_ref, D_ref,
                     nw_ref, wo_ref, em_ref, cm_ref, cmT_ref, out_ref,
                     s_ref, carry_ref, y_scr, *, TL, exp_dtype):
    """One (direction, batch, seq-chunk) grid step of the fused FB-Mamba2 pass.

    direction 0 = forward, 1 = backward (time reversal folded into the math;
    output is produced directly in original sequence order).
    """
    f32 = jnp.float32
    bf16 = jnp.bfloat16
    is_rev = pl.program_id(0) == 1
    c_idx = pl.program_id(2)

    # reset carried SSM state and conv context at the first chunk processed
    @pl.when(c_idx == 0)
    def _():
        s_ref[...] = jnp.zeros_like(s_ref)
        carry_ref[...] = jnp.zeros_like(carry_ref)

    u = u_ref[...]                                                  # (TL,128) f32

    # ---- fused in_proj (bf16 MXU, f32 accumulate): cols [z|x|B|C|dt|pad] ----
    proj = jnp.dot(u.astype(bf16), w_in_ref[...], preferred_element_type=f32)
    z_pre = proj[:, 0:D_INNER]                                      # (TL,256)
    xbc_pre = proj[:, D_INNER:D_INNER + CONV_DIM]                   # (TL,384)
    dt_raw = proj[:, D_INNER + CONV_DIM:D_INNER + CONV_DIM + NHEADS]  # (TL,8)

    # ---- depthwise conv1d (+bias) + SiLU ------------------------------------
    # forward : causal taps, carry = previous chunk's last 8 pre-conv rows (top)
    # backward: anti-causal taps, carry = next chunk's first 8 rows (bottom)
    carry = carry_ref[...]                                          # (8,384)
    padded = jnp.concatenate([carry, xbc_pre, carry], axis=0)       # (TL+16,384)
    carry_ref[...] = jnp.where(is_rev, xbc_pre[0:8, :], xbc_pre[TL - 8:TL, :])
    cw = cw_ref[...]                                                # (4,384)
    acc_f = cb_ref[...]
    acc_b = cb_ref[...]
    for k in range(D_CONV):
        acc_f = acc_f + padded[5 + k:5 + k + TL, :] * cw[k:k + 1, :]    # x[t-(3-k)]
        acc_b = acc_b + padded[11 - k:11 - k + TL, :] * cw[k:k + 1, :]  # x[t+(3-k)]
    xbc = _silu(jnp.where(is_rev, acc_b, acc_f))
    x_c = xbc[:, 0:D_INNER]                                         # (TL,256)
    B_c = xbc[:, D_INNER:D_INNER + D_STATE]                         # (TL,64)
    C_c = xbc[:, D_INNER + D_STATE:CONV_DIM]                        # (TL,64)

    # ---- per-head dt / direction-aware inclusive decay cumsum ----------------
    dt_sp = _softplus(dt_raw + dtb_ref[...])                        # (TL,8)
    dA = dt_sp * A_ref[...]                                         # (TL,8), <= 0
    cm = cm_ref[...]                                                # (TL,TL) mask (dir)
    cumA = jnp.dot(cm, dA, preferred_element_type=f32)              # (TL,8)
    cumA_T = lax.dot_general(dA, cmT_ref[...], (((0,), (0,)), ((), ())),
                             preferred_element_type=f32)            # (8,TL)
    cumA_last = jnp.where(is_rev, cumA[0:1, :], cumA[TL - 1:TL, :]) # chunk-end row

    # head -> channel expansion (one-hot weight, tiny K=8 matmuls, kept f32)
    e_mat = em_ref[...]                                             # (8,256)
    dt_full = jnp.dot(dt_sp, e_mat, preferred_element_type=f32)     # (TL,256)
    dtx = dt_full * x_c
    dtx_b = dtx.astype(bf16)
    seg_out = jnp.dot(jnp.exp(cumA), e_mat, preferred_element_type=f32)
    seg_state = jnp.dot(jnp.exp(cumA_last - cumA), e_mat, preferred_element_type=f32)
    chunk_decay = jnp.dot(jnp.exp(cumA_last), e_mat, preferred_element_type=f32)

    # ---- intra-chunk term: per-head decay matrices, results into VMEM scratch
    CBT = lax.dot_general(C_c.astype(bf16), B_c.astype(bf16),
                          (((1,), (1,)), ((), ())),
                          preferred_element_type=f32)               # (TL,TL) = C@B^T
    neg_mask = (cm - 1.0) * jnp.float32(1e30)                       # 0 allowed / -1e30
    CBT_l = CBT.astype(exp_dtype)
    for h in range(NHEADS):
        col = cumA[:, h:h + 1]                                      # (TL,1)
        row = cumA_T[h:h + 1, :]                                    # (1,TL)
        diff = (col - row + neg_mask).astype(exp_dtype)             # mask BEFORE cast
        P = (jnp.exp(diff) * CBT_l).astype(bf16)
        y_scr[:, h * HEADDIM:(h + 1) * HEADDIM] = jnp.dot(
            P, dtx_b[:, h * HEADDIM:(h + 1) * HEADDIM],
            preferred_element_type=f32)

    # ---- carried-state contribution + D skip --------------------------------
    S_in = s_ref[...]                                               # (64,256) f32
    CS = jnp.dot(C_c.astype(bf16), S_in.astype(bf16), preferred_element_type=f32)
    y = y_scr[...] + seg_out * CS + D_ref[...] * x_c

    # ---- state update for the next processed chunk ---------------------------
    s_ref[...] = chunk_decay * S_in + lax.dot_general(
        B_c.astype(bf16), (seg_state * dtx).astype(bf16),
        (((0,), (0,)), ((), ())), preferred_element_type=f32)       # (64,256)

    # ---- gated RMSNorm + out_proj + fused residual ---------------------------
    yg = y * _silu(z_pre)
    var = jnp.mean(yg * yg, axis=-1, keepdims=True)
    yn = yg * lax.rsqrt(var + EPS) * nw_ref[...]
    out = jnp.dot(yn.astype(bf16), wo_ref[...], preferred_element_type=f32)
    out_ref[...] = (out + u).astype(out_ref.dtype)


# ------------------------------- wrapper -------------------------------------
def fb_mamba_block(u, params_fwd, params_bwd, *, chunk=64):
    """Fused FBMambaBlock: cat([mamba_fwd(u)+u, flip(mamba_bwd(flip(u)))+u], -1)."""
    Bsz, L, dm = u.shape
    if dm != D_MODEL:
        raise ValueError("d_model mismatch")
    TL = min(chunk, L)
    if L % TL != 0 or TL % 8 != 0 or TL < 8:
        raise ValueError("sequence length must be a multiple of 8 and of the chunk")
    NC = L // TL
    exp_dtype = _exp_dtype_for_device()

    def stack(k, dtype=None):
        a = jnp.stack([params_fwd[k], params_bwd[k]], axis=0)
        return a.astype(dtype) if dtype is not None else a

    w_in = stack("w_in", jnp.bfloat16)        # (2,128,768)
    cw = stack("cw")                          # (2,4,384)
    cb = stack("cb")                          # (2,1,384)
    dtb = stack("dtb")                        # (2,1,8)
    A_h = stack("A_head")                     # (2,1,8)
    D_p = stack("D")                          # (2,1,256)
    nw = stack("nw")                          # (2,1,256)
    wo = stack("wo", jnp.bfloat16)            # (2,256,128)
    em = params_fwd["expand"]                 # (8,256), shared one-hot

    # direction-indexed decay masks: 0 -> lower-tri (causal), 1 -> upper-tri
    # (anti-causal).  cm[1-d] == cm[d]^T, so the same array serves as cumA^T mask.
    ri = np.arange(TL)[:, None]
    ci = np.arange(TL)[None, :]
    cm = jnp.asarray(np.stack([(ri >= ci), (ri <= ci)], 0).astype(np.float32))

    def seq_blk(d, c):                        # forward: c ; backward: NC-1-c
        return d * (NC - 1) + (1 - 2 * d) * c

    def dir_spec(arr):
        nd = arr.ndim
        return pl.BlockSpec((None,) + arr.shape[1:],
                            lambda d, b, c, _nd=nd: (d,) + (0,) * (_nd - 1))

    in_specs = [
        pl.BlockSpec((None, TL, D_MODEL), lambda d, b, c: (b, seq_blk(d, c), 0)),
        dir_spec(w_in), dir_spec(cw), dir_spec(cb), dir_spec(dtb),
        dir_spec(A_h), dir_spec(D_p), dir_spec(nw), dir_spec(wo),
        pl.BlockSpec(em.shape, lambda d, b, c: (0, 0)),
        pl.BlockSpec((None, TL, TL), lambda d, b, c: (d, 0, 0)),
        pl.BlockSpec((None, TL, TL), lambda d, b, c: (1 - d, 0, 0)),
    ]
    out_specs = pl.BlockSpec((None, TL, D_MODEL),
                             lambda d, b, c: (b, seq_blk(d, c), d))

    kernel = functools.partial(fb_mamba2_kernel, TL=TL, exp_dtype=exp_dtype)
    return pl.pallas_call(
        kernel,
        grid=(2, Bsz, NC),
        in_specs=in_specs,
        out_specs=out_specs,
        out_shape=jax.ShapeDtypeStruct((Bsz, L, 2 * D_MODEL), jnp.float32),
        scratch_shapes=[pltpu.VMEM((D_STATE, D_INNER), jnp.float32),  # SSM state
                        pltpu.VMEM((8, CONV_DIM), jnp.float32),       # conv carry
                        pltpu.VMEM((TL, D_INNER), jnp.float32)],      # intra-chunk y
        compiler_params=pltpu.CompilerParams(
            dimension_semantics=("parallel", "parallel", "arbitrary")),
    )(u, w_in, cw, cb, dtb, A_h, D_p, nw, wo, em, cm, cm)


# ------------------------- parameter initialization --------------------------
def init_mamba_params(key):
    ks = jax.random.split(key, 6)
    w_in = jax.random.normal(ks[0], (D_IN_PROJ, D_MODEL), jnp.float32) * 0.02
    conv_w = jax.random.normal(ks[1], (CONV_DIM, D_CONV), jnp.float32) * 0.2
    conv_b = jax.random.normal(ks[2], (CONV_DIM,), jnp.float32) * 0.1

    # dt_bias = inverse-softplus of dt ~ LogUniform(1e-3, 1e-1)
    dt = jnp.exp(jax.random.uniform(ks[3], (NHEADS,)) *
                 (jnp.log(0.1) - jnp.log(0.001)) + jnp.log(0.001))
    dt = jnp.maximum(dt, 1e-4)
    dt_bias = dt + jnp.log(-jnp.expm1(-dt))

    A_log = jnp.log(jax.random.uniform(ks[4], (NHEADS,), minval=1.0, maxval=16.0))
    norm_w = jnp.ones((D_INNER,), jnp.float32)
    w_out = jax.random.normal(ks[5], (D_MODEL, D_INNER), jnp.float32) * 0.02

    # fused in_proj weight: rows [z, x, B, C, dt]; transpose, pad 648 -> 768
    w_in_f = jnp.zeros((D_MODEL, PROJ_PAD), jnp.float32)
    w_in_f = w_in_f.at[:, :D_IN_PROJ].set(w_in.T)

    # one-hot head -> channel expansion matrix (8, 256)
    expand = (jnp.arange(D_INNER)[None, :] // HEADDIM ==
              jnp.arange(NHEADS)[:, None]).astype(jnp.float32)

    A_head = -jnp.exp(A_log)[None, :]            # (1, nheads), negative
    D_row = jnp.ones((1, D_INNER), jnp.float32)

    return dict(w_in=w_in_f, cw=conv_w.T, cb=conv_b[None, :],
                dtb=dt_bias[None, :], A_head=A_head, D=D_row,
                nw=norm_w[None, :], expand=expand, wo=w_out.T)


# ----------------------- pure-JAX reference (for checking) -------------------
def mamba2_reference(u, p):
    hp = lax.Precision.HIGHEST
    proj = jnp.matmul(u, p["w_in"], precision=hp)
    z = proj[..., 0:D_INNER]
    xbc = proj[..., D_INNER:D_INNER + CONV_DIM]
    dt_raw = proj[..., D_INNER + CONV_DIM:D_INNER + CONV_DIM + NHEADS]
    L = u.shape[1]

    pad = jnp.pad(xbc, ((0, 0), (D_CONV - 1, 0), (0, 0)))
    acc = jnp.zeros_like(xbc) + p["cb"]
    for k in range(D_CONV):
        acc = acc + pad[:, k:k + L, :] * p["cw"][k]
    xbc = _silu(acc)
    x_c = xbc[..., 0:D_INNER]
    B_c = xbc[..., D_INNER:D_INNER + D_STATE]
    C_c = xbc[..., D_INNER + D_STATE:]

    dt_sp = jax.nn.softplus(dt_raw + p["dtb"])
    dt_full = jnp.repeat(dt_sp, HEADDIM, axis=-1)
    A_full = jnp.repeat(p["A_head"], HEADDIM, axis=-1)[0]
    D_row = p["D"][0]

    def scan_one(x_b, B_b, C_b, dt_b):
        def step(S, inp):
            x_t, B_t, C_t, dt_t = inp
            dA = jnp.exp(dt_t * A_full)
            S = dA[None, :] * S + B_t[:, None] * (dt_t * x_t)[None, :]
            y_t = jnp.dot(C_t, S, precision=hp) + D_row * x_t
            return S, y_t
        S0 = jnp.zeros((D_STATE, D_INNER), jnp.float32)
        _, ys = lax.scan(step, S0, (x_b, B_b, C_b, dt_b))
        return ys

    y = jax.vmap(scan_one)(x_c, B_c, C_c, dt_full)
    yg = y * _silu(z)
    var = jnp.mean(yg * yg, axis=-1, keepdims=True)
    yn = yg * lax.rsqrt(var + EPS) * p["nw"][0]
    return jnp.matmul(yn, p["wo"], precision=hp)


def fb_mamba_block_reference(x, params_fwd, params_bwd):
    fwd = mamba2_reference(x, params_fwd)
    bwd = jnp.flip(mamba2_reference(jnp.flip(x, axis=1), params_bwd), axis=1)
    return jnp.concatenate([fwd + x, bwd + x], axis=-1)


if __name__ == "__main__":
    key = jax.random.PRNGKey(0)
    kx, kf, kb = jax.random.split(key, 3)
    Bsz, L = 2, 8
    x = jax.random.normal(kx, (Bsz, L, D_MODEL), jnp.float32)
    params_fwd = init_mamba_params(kf)
    params_bwd = init_mamba_params(kb)

    out = jax.jit(lambda xx: fb_mamba_block(xx, params_fwd, params_bwd))(x)
    out = jax.block_until_ready(out)
    assert out.shape == (Bsz, L, 2 * D_MODEL)

    ref = fb_mamba_block_reference(x, params_fwd, params_bwd)
    np.testing.assert_allclose(np.asarray(out), np.asarray(ref),
                               atol=3e-2, rtol=3e-2)
    print("KERNEL_OK")
</pallas_src>

<mosaic_0001>
module attributes {stable_mosaic.version = 11 : i64} {
  func.func @fb_mamba2_kernel(%arg0: i32, %arg1: i32, %arg2: i32, %arg3: memref<1x8x128xf32, #tpu.memory_space<vmem>>, %arg4: memref<1x128x768xbf16, #tpu.memory_space<vmem>>, %arg5: memref<1x4x384xf32, #tpu.memory_space<vmem>>, %arg6: memref<1x1x384xf32, #tpu.memory_space<vmem>>, %arg7: memref<1x1x8xf32, #tpu.memory_space<vmem>>, %arg8: memref<1x1x8xf32, #tpu.memory_space<vmem>>, %arg9: memref<1x1x256xf32, #tpu.memory_space<vmem>>, %arg10: memref<1x1x256xf32, #tpu.memory_space<vmem>>, %arg11: memref<1x256x128xbf16, #tpu.memory_space<vmem>>, %arg12: memref<8x256xf32, #tpu.memory_space<vmem>>, %arg13: memref<1x8x8xf32, #tpu.memory_space<vmem>>, %arg14: memref<1x8x8xf32, #tpu.memory_space<vmem>>, %arg15: memref<1x8x128xf32, #tpu.memory_space<vmem>>, %arg16: memref<64x256xf32, #tpu.memory_space<vmem>>, %arg17: memref<8x384xf32, #tpu.memory_space<vmem>>, %arg18: memref<8x256xf32, #tpu.memory_space<vmem>>) attributes {dimension_semantics = [#tpu.dimension_semantics<parallel>, #tpu.dimension_semantics<parallel>, #tpu.dimension_semantics<arbitrary>], iteration_bounds = array<i64: 2, 2, 1>, scalar_prefetch = 0 : i64, scratch_operands = 3 : i64, tpu.core_type = #tpu.core_type<tc>, window_params = [{transform_indices = @transform_0, window_bounds = array<i64: 1, 8, 128>}, {transform_indices = @transform_1, window_bounds = array<i64: 1, 128, 768>}, {transform_indices = @transform_2, window_bounds = array<i64: 1, 4, 384>}, {transform_indices = @transform_3, window_bounds = array<i64: 1, 1, 384>}, {transform_indices = @transform_4, window_bounds = array<i64: 1, 1, 8>}, {transform_indices = @transform_5, window_bounds = array<i64: 1, 1, 8>}, {transform_indices = @transform_6, window_bounds = array<i64: 1, 1, 256>}, {transform_indices = @transform_7, window_bounds = array<i64: 1, 1, 256>}, {transform_indices = @transform_8, window_bounds = array<i64: 1, 256, 128>}, {pipeline_mode = #tpu.pipeline_mode<synchronous>, transform_indices = @transform_9, window_bounds = array<i64: 8, 256>}, {transform_indices = @transform_10, window_bounds = array<i64: 1, 8, 8>}, {transform_indices = @transform_11, window_bounds = array<i64: 1, 8, 8>}, {transform_indices = @transform_12, window_bounds = array<i64: 1, 8, 128>}]} {
    %c1_i32 = arith.constant 1 : i32
    %0 = arith.cmpi eq, %arg0, %c1_i32 : i32
    %c0_i32 = arith.constant 0 : i32
    %1 = arith.cmpi eq, %arg2, %c0_i32 : i32
    %2 = arith.extui %1 : i1 to i32
    %c0_i32_0 = arith.constant 0 : i32
    %3 = arith.cmpi ne, %2, %c0_i32_0 : i32
    scf.if %3 {
      %cst_88 = arith.constant 0.000000e+00 : f32
      %266 = vector.broadcast %cst_88 : f32 to vector<64x256xf32>
      %c0_89 = arith.constant 0 : index
      %c0_90 = arith.constant 0 : index
      %267 = vector.load %arg16[%c0_89, %c0_90] : memref<64x256xf32, #tpu.memory_space<vmem>>, vector<64x256xf32>
      tpu.vector_store %arg16[%c0_89, %c0_90], %266 {strides = array<i32>} : memref<64x256xf32, #tpu.memory_space<vmem>>, vector<64x256xf32>,
      %cst_91 = arith.constant 0.000000e+00 : f32
      %268 = vector.broadcast %cst_91 : f32 to vector<8x384xf32>
      %c0_92 = arith.constant 0 : index
      %c0_93 = arith.constant 0 : index
      %269 = vector.load %arg17[%c0_92, %c0_93] : memref<8x384xf32, #tpu.memory_space<vmem>>, vector<8x384xf32>
      tpu.vector_store %arg17[%c0_92, %c0_93], %268 {strides = array<i32>} : memref<8x384xf32, #tpu.memory_space<vmem>>, vector<8x384xf32>,
    } else {
    }
    %c0 = arith.constant 0 : index
    %c0_1 = arith.constant 0 : index
    %c0_2 = arith.constant 0 : index
    %4 = vector.load %arg3[%c0, %c0_1, %c0_2] : memref<1x8x128xf32, #tpu.memory_space<vmem>>, vector<1x8x128xf32>
    %5 = vector.shape_cast %4 : vector<1x8x128xf32> to vector<8x128xf32>
    %6 = arith.truncf %5 : vector<8x128xf32> to vector<8x128xbf16>
    %c0_3 = arith.constant 0 : index
    %c0_4 = arith.constant 0 : index
    %c0_5 = arith.constant 0 : index
    %7 = vector.load %arg4[%c0_3, %c0_4, %c0_5] : memref<1x128x768xbf16, #tpu.memory_space<vmem>>, vector<1x128x768xbf16>
    %8 = vector.shape_cast %7 : vector<1x128x768xbf16> to vector<128x768xbf16>
    %cst = arith.constant dense<0.000000e+00> : vector<8x768xf32>
    %9 = tpu.matmul %6, %8, %cst {dimension_numbers = #tpu.dot_dimension_numbers<[1], [0], [0], [1], [0, 0, 1, 1], [], []>} : vector<8x128xbf16>, vector<128x768xbf16>, vector<8x768xf32> -> vector<8x768xf32>
    %10 = vector.extract_strided_slice %9 {offsets = [0, 0], sizes = [8, 256], strides = [1, 1]} : vector<8x768xf32> to vector<8x256xf32>
    %11 = vector.extract_strided_slice %9 {offsets = [0, 256], sizes = [8, 384], strides = [1, 1]} : vector<8x768xf32> to vector<8x384xf32>
    %12 = vector.extract_strided_slice %9 {offsets = [0, 640], sizes = [8, 8], strides = [1, 1]} : vector<8x768xf32> to vector<8x8xf32>
    %c0_6 = arith.constant 0 : index
    %c0_7 = arith.constant 0 : index
    %13 = vector.load %arg17[%c0_6, %c0_7] : memref<8x384xf32, #tpu.memory_space<vmem>>, vector<8x384xf32>
    %14 = tpu.concatenate %13, %11, %13 in 0 : vector<8x384xf32>, vector<8x384xf32>, vector<8x384xf32> -> vector<24x384xf32>
    %15 = arith.select %0, %11, %11 : vector<8x384xf32>
    %c0_8 = arith.constant 0 : index
    %c0_9 = arith.constant 0 : index
    %16 = vector.load %arg17[%c0_8, %c0_9] : memref<8x384xf32, #tpu.memory_space<vmem>>, vector<8x384xf32>
    tpu.vector_store %arg17[%c0_8, %c0_9], %15 {strides = array<i32>} : memref<8x384xf32, #tpu.memory_space<vmem>>, vector<8x384xf32>,
    %c0_10 = arith.constant 0 : index
    %c0_11 = arith.constant 0 : index
    %c0_12 = arith.constant 0 : index
    %17 = vector.load %arg5[%c0_10, %c0_11, %c0_12] : memref<1x4x384xf32, #tpu.memory_space<vmem>>, vector<1x4x384xf32>
    %18 = vector.shape_cast %17 : vector<1x4x384xf32> to vector<4x384xf32>
    %c0_13 = arith.constant 0 : index
    %c0_14 = arith.constant 0 : index
    %c0_15 = arith.constant 0 : index
    %19 = vector.load %arg6[%c0_13, %c0_14, %c0_15] : memref<1x1x384xf32, #tpu.memory_space<vmem>>, vector<1x1x384xf32>
    %20 = vector.shape_cast %19 : vector<1x1x384xf32> to vector<1x384xf32>
    %c0_16 = arith.constant 0 : index
    %c0_17 = arith.constant 0 : index
    %c0_18 = arith.constant 0 : index
    %21 = vector.load %arg6[%c0_16, %c0_17, %c0_18] : memref<1x1x384xf32, #tpu.memory_space<vmem>>, vector<1x1x384xf32>
    %22 = vector.shape_cast %21 : vector<1x1x384xf32> to vector<1x384xf32>
    %23 = vector.extract_strided_slice %14 {offsets = [5, 0], sizes = [8, 384], strides = [1, 1]} : vector<24x384xf32> to vector<8x384xf32>
    %24 = vector.extract_strided_slice %18 {offsets = [0, 0], sizes = [1, 384], strides = [1, 1]} : vector<4x384xf32> to vector<1x384xf32>
    %25 = vector.broadcast %24 : vector<1x384xf32> to vector<8x384xf32>
    %26 = arith.mulf %23, %25 : vector<8x384xf32>
    %27 = vector.broadcast %20 : vector<1x384xf32> to vector<8x384xf32>
    %28 = arith.addf %27, %26 : vector<8x384xf32>
    %29 = vector.extract_strided_slice %14 {offsets = [11, 0], sizes = [8, 384], strides = [1, 1]} : vector<24x384xf32> to vector<8x384xf32>
    %30 = vector.extract_strided_slice %18 {offsets = [0, 0], sizes = [1, 384], strides = [1, 1]} : vector<4x384xf32> to vector<1x384xf32>
    %31 = vector.broadcast %30 : vector<1x384xf32> to vector<8x384xf32>
    %32 = arith.mulf %29, %31 : vector<8x384xf32>
    %33 = vector.broadcast %22 : vector<1x384xf32> to vector<8x384xf32>
    %34 = arith.addf %33, %32 : vector<8x384xf32>
    %35 = vector.extract_strided_slice %14 {offsets = [6, 0], sizes = [8, 384], strides = [1, 1]} : vector<24x384xf32> to vector<8x384xf32>
    %36 = vector.extract_strided_slice %18 {offsets = [1, 0], sizes = [1, 384], strides = [1, 1]} : vector<4x384xf32> to vector<1x384xf32>
    %37 = vector.broadcast %36 : vector<1x384xf32> to vector<8x384xf32>
    %38 = arith.mulf %35, %37 : vector<8x384xf32>
    %39 = arith.addf %28, %38 : vector<8x384xf32>
    %40 = vector.extract_strided_slice %14 {offsets = [10, 0], sizes = [8, 384], strides = [1, 1]} : vector<24x384xf32> to vector<8x384xf32>
    %41 = vector.extract_strided_slice %18 {offsets = [1, 0], sizes = [1, 384], strides = [1, 1]} : vector<4x384xf32> to vector<1x384xf32>
    %42 = vector.broadcast %41 : vector<1x384xf32> to vector<8x384xf32>
    %43 = arith.mulf %40, %42 : vector<8x384xf32>
    %44 = arith.addf %34, %43 : vector<8x384xf32>
    %45 = vector.extract_strided_slice %14 {offsets = [7, 0], sizes = [8, 384], strides = [1, 1]} : vector<24x384xf32> to vector<8x384xf32>
    %46 = vector.extract_strided_slice %18 {offsets = [2, 0], sizes = [1, 384], strides = [1, 1]} : vector<4x384xf32> to vector<1x384xf32>
    %47 = vector.broadcast %46 : vector<1x384xf32> to vector<8x384xf32>
    %48 = arith.mulf %45, %47 : vector<8x384xf32>
    %49 = arith.addf %39, %48 : vector<8x384xf32>
    %50 = vector.extract_strided_slice %14 {offsets = [9, 0], sizes = [8, 384], strides = [1, 1]} : vector<24x384xf32> to vector<8x384xf32>
    %51 = vector.extract_strided_slice %18 {offsets = [2, 0], sizes = [1, 384], strides = [1, 1]} : vector<4x384xf32> to vector<1x384xf32>
    %52 = vector.broadcast %51 : vector<1x384xf32> to vector<8x384xf32>
    %53 = arith.mulf %50, %52 : vector<8x384xf32>
    %54 = arith.addf %44, %53 : vector<8x384xf32>
    %55 = vector.extract_strided_slice %14 {offsets = [8, 0], sizes = [8, 384], strides = [1, 1]} : vector<24x384xf32> to vector<8x384xf32>
    %56 = vector.extract_strided_slice %18 {offsets = [3, 0], sizes = [1, 384], strides = [1, 1]} : vector<4x384xf32> to vector<1x384xf32>
    %57 = vector.broadcast %56 : vector<1x384xf32> to vector<8x384xf32>
    %58 = arith.mulf %55, %57 : vector<8x384xf32>
    %59 = arith.addf %49, %58 : vector<8x384xf32>
    %60 = vector.extract_strided_slice %14 {offsets = [8, 0], sizes = [8, 384], strides = [1, 1]} : vector<24x384xf32> to vector<8x384xf32>
    %61 = vector.extract_strided_slice %18 {offsets = [3, 0], sizes = [1, 384], strides = [1, 1]} : vector<4x384xf32> to vector<1x384xf32>
    %62 = vector.broadcast %61 : vector<1x384xf32> to vector<8x384xf32>
    %63 = arith.mulf %60, %62 : vector<8x384xf32>
    %64 = arith.addf %54, %63 : vector<8x384xf32>
    %65 = arith.select %0, %64, %59 : vector<8x384xf32>
    %66 = arith.negf %65 : vector<8x384xf32>
    %67 = math.exp %66 : vector<8x384xf32>
    %cst_19 = arith.constant 1.000000e+00 : f32
    %68 = vector.broadcast %cst_19 : f32 to vector<8x384xf32>
    %69 = arith.addf %68, %67 : vector<8x384xf32>
    %70 = arith.divf %68, %69 : vector<8x384xf32>
    %71 = arith.mulf %65, %70 : vector<8x384xf32>
    %72 = vector.extract_strided_slice %71 {offsets = [0, 0], sizes = [8, 256], strides = [1, 1]} : vector<8x384xf32> to vector<8x256xf32>
    %73 = vector.extract_strided_slice %71 {offsets = [0, 256], sizes = [8, 64], strides = [1, 1]} : vector<8x384xf32> to vector<8x64xf32>
    %74 = vector.extract_strided_slice %71 {offsets = [0, 320], sizes = [8, 64], strides = [1, 1]} : vector<8x384xf32> to vector<8x64xf32>
    %c0_20 = arith.constant 0 : index
    %c0_21 = arith.constant 0 : index
    %c0_22 = arith.constant 0 : index
    %75 = vector.load %arg7[%c0_20, %c0_21, %c0_22] : memref<1x1x8xf32, #tpu.memory_space<vmem>>, vector<1x1x8xf32>
    %76 = vector.shape_cast %75 : vector<1x1x8xf32> to vector<1x8xf32>
    %77 = vector.broadcast %76 : vector<1x8xf32> to vector<8x8xf32>
    %78 = arith.addf %12, %77 : vector<8x8xf32>
    %cst_23 = arith.constant 0.000000e+00 : f32
    %79 = vector.broadcast %cst_23 : f32 to vector<8x8xf32>
    %80 = arith.maximumf %78, %79 : vector<8x8xf32>
    %81 = math.absf %78 : vector<8x8xf32>
    %cst_24 = arith.constant 0.000000e+00 : f32
    %82 = vector.broadcast %cst_24 : f32 to vector<8x8xf32>
    %83 = arith.subf %82, %81 : vector<8x8xf32>
    %84 = math.exp %83 : vector<8x8xf32>
    %cst_25 = arith.constant 1.000000e+00 : f32
    %85 = vector.broadcast %cst_25 : f32 to vector<8x8xf32>
    %86 = arith.addf %85, %84 : vector<8x8xf32>
    %87 = math.log %86 : vector<8x8xf32>
    %88 = arith.addf %80, %87 : vector<8x8xf32>
    %c0_26 = arith.constant 0 : index
    %c0_27 = arith.constant 0 : index
    %c0_28 = arith.constant 0 : index
    %89 = vector.load %arg8[%c0_26, %c0_27, %c0_28] : memref<1x1x8xf32, #tpu.memory_space<vmem>>, vector<1x1x8xf32>
    %90 = vector.shape_cast %89 : vector<1x1x8xf32> to vector<1x8xf32>
    %91 = vector.broadcast %90 : vector<1x8xf32> to vector<8x8xf32>
    %92 = arith.mulf %88, %91 : vector<8x8xf32>
    %c0_29 = arith.constant 0 : index
    %c0_30 = arith.constant 0 : index
    %c0_31 = arith.constant 0 : index
    %93 = vector.load %arg13[%c0_29, %c0_30, %c0_31] : memref<1x8x8xf32, #tpu.memory_space<vmem>>, vector<1x8x8xf32>
    %94 = vector.shape_cast %93 : vector<1x8x8xf32> to vector<8x8xf32>
    %cst_32 = arith.constant dense<0.000000e+00> : vector<8x8xf32>
    %95 = tpu.matmul %94, %92, %cst_32 {dimension_numbers = #tpu.dot_dimension_numbers<[1], [0], [0], [1], [0, 0, 1, 1], [], []>} : vector<8x8xf32>, vector<8x8xf32>, vector<8x8xf32> -> vector<8x8xf32>
    %c0_33 = arith.constant 0 : index
    %c0_34 = arith.constant 0 : index
    %c0_35 = arith.constant 0 : index
    %96 = vector.load %arg14[%c0_33, %c0_34, %c0_35] : memref<1x8x8xf32, #tpu.memory_space<vmem>>, vector<1x8x8xf32>
    %97 = vector.shape_cast %96 : vector<1x8x8xf32> to vector<8x8xf32>
    %cst_36 = arith.constant dense<0.000000e+00> : vector<8x8xf32>
    %98 = tpu.matmul %92, %97, %cst_36 {dimension_numbers = #tpu.dot_dimension_numbers<[0], [0], [1], [1], [0, 1, 1, 1], [], []>} : vector<8x8xf32>, vector<8x8xf32>, vector<8x8xf32> -> vector<8x8xf32>
    %99 = vector.extract_strided_slice %95 {offsets = [0, 0], sizes = [1, 8], strides = [1, 1]} : vector<8x8xf32> to vector<1x8xf32>
    %100 = vector.extract_strided_slice %95 {offsets = [7, 0], sizes = [1, 8], strides = [1, 1]} : vector<8x8xf32> to vector<1x8xf32>
    %101 = arith.select %0, %99, %100 : vector<1x8xf32>
    %c0_37 = arith.constant 0 : index
    %c0_38 = arith.constant 0 : index
    %102 = vector.load %arg12[%c0_37, %c0_38] : memref<8x256xf32, #tpu.memory_space<vmem>>, vector<8x256xf32>
    %cst_39 = arith.constant dense<0.000000e+00> : vector<8x256xf32>
    %103 = tpu.matmul %88, %102, %cst_39 {dimension_numbers = #tpu.dot_dimension_numbers<[1], [0], [0], [1], [0, 0, 1, 1], [], []>} : vector<8x8xf32>, vector<8x256xf32>, vector<8x256xf32> -> vector<8x256xf32>
    %104 = arith.mulf %103, %72 : vector<8x256xf32>
    %105 = arith.truncf %104 : vector<8x256xf32> to vector<8x256xbf16>
    %106 = math.exp %95 : vector<8x8xf32>
    %cst_40 = arith.constant dense<0.000000e+00> : vector<8x256xf32>
    %107 = tpu.matmul %106, %102, %cst_40 {dimension_numbers = #tpu.dot_dimension_numbers<[1], [0], [0], [1], [0, 0, 1, 1], [], []>} : vector<8x8xf32>, vector<8x256xf32>, vector<8x256xf32> -> vector<8x256xf32>
    %108 = vector.broadcast %101 : vector<1x8xf32> to vector<8x8xf32>
    %109 = arith.subf %108, %95 : vector<8x8xf32>
    %110 = math.exp %109 : vector<8x8xf32>
    %cst_41 = arith.constant dense<0.000000e+00> : vector<8x256xf32>
    %111 = tpu.matmul %110, %102, %cst_41 {dimension_numbers = #tpu.dot_dimension_numbers<[1], [0], [0], [1], [0, 0, 1, 1], [], []>} : vector<8x8xf32>, vector<8x256xf32>, vector<8x256xf32> -> vector<8x256xf32>
    %112 = math.exp %101 : vector<1x8xf32>
    %cst_42 = arith.constant dense<0.000000e+00> : vector<1x256xf32>
    %113 = tpu.matmul %112, %102, %cst_42 {dimension_numbers = #tpu.dot_dimension_numbers<[1], [0], [0], [1], [0, 0, 1, 1], [], []>} : vector<1x8xf32>, vector<8x256xf32>, vector<1x256xf32> -> vector<1x256xf32>
    %114 = arith.truncf %74 : vector<8x64xf32> to vector<8x64xbf16>
    %115 = arith.truncf %73 : vector<8x64xf32> to vector<8x64xbf16>
    %cst_43 = arith.constant dense<0.000000e+00> : vector<8x8xf32>
    %116 = tpu.matmul %114, %115, %cst_43 {dimension_numbers = #tpu.dot_dimension_numbers<[1], [1], [0], [0], [0, 0, 1, 0], [], []>} : vector<8x64xbf16>, vector<8x64xbf16>, vector<8x8xf32> -> vector<8x8xf32>
    %cst_44 = arith.constant 1.000000e+00 : f32
    %117 = vector.broadcast %cst_44 : f32 to vector<8x8xf32>
    %118 = arith.subf %94, %117 : vector<8x8xf32>
    %cst_45 = arith.constant 1.000000e+30 : f32
    %119 = vector.broadcast %cst_45 : f32 to vector<8x8xf32>
    %120 = arith.mulf %118, %119 : vector<8x8xf32>
    %121 = vector.extract_strided_slice %95 {offsets = [0, 0], sizes = [8, 1], strides = [1, 1]} : vector<8x8xf32> to vector<8x1xf32>
    %122 = vector.extract_strided_slice %98 {offsets = [0, 0], sizes = [1, 8], strides = [1, 1]} : vector<8x8xf32> to vector<1x8xf32>
    %123 = vector.broadcast %121 : vector<8x1xf32> to vector<8x8xf32>
    %124 = vector.broadcast %122 : vector<1x8xf32> to vector<8x8xf32>
    %125 = arith.subf %123, %124 : vector<8x8xf32>
    %126 = arith.addf %125, %120 : vector<8x8xf32>
    %127 = math.exp %126 : vector<8x8xf32>
    %128 = arith.mulf %127, %116 : vector<8x8xf32>
    %129 = arith.truncf %128 : vector<8x8xf32> to vector<8x8xbf16>
    %130 = vector.extract_strided_slice %105 {offsets = [0, 0], sizes = [8, 32], strides = [1, 1]} : vector<8x256xbf16> to vector<8x32xbf16>
    %cst_46 = arith.constant dense<0.000000e+00> : vector<8x32xf32>
    %131 = tpu.matmul %129, %130, %cst_46 {dimension_numbers = #tpu.dot_dimension_numbers<[1], [0], [0], [1], [0, 0, 1, 1], [], []>} : vector<8x8xbf16>, vector<8x32xbf16>, vector<8x32xf32> -> vector<8x32xf32>
    %c0_47 = arith.constant 0 : index
    %c0_48 = arith.constant 0 : index
    %132 = vector.load %arg18[%c0_47, %c0_48] : memref<8x256xf32, #tpu.memory_space<vmem>>, vector<8x32xf32>
    tpu.vector_store %arg18[%c0_47, %c0_48], %131 {strides = array<i32>} : memref<8x256xf32, #tpu.memory_space<vmem>>, vector<8x32xf32>,
    %133 = vector.extract_strided_slice %95 {offsets = [0, 1], sizes = [8, 1], strides = [1, 1]} : vector<8x8xf32> to vector<8x1xf32>
    %134 = vector.extract_strided_slice %98 {offsets = [1, 0], sizes = [1, 8], strides = [1, 1]} : vector<8x8xf32> to vector<1x8xf32>
    %135 = vector.broadcast %133 : vector<8x1xf32> to vector<8x8xf32>
    %136 = vector.broadcast %134 : vector<1x8xf32> to vector<8x8xf32>
    %137 = arith.subf %135, %136 : vector<8x8xf32>
    %138 = arith.addf %137, %120 : vector<8x8xf32>
    %139 = math.exp %138 : vector<8x8xf32>
    %140 = arith.mulf %139, %116 : vector<8x8xf32>
    %141 = arith.truncf %140 : vector<8x8xf32> to vector<8x8xbf16>
    %142 = vector.extract_strided_slice %105 {offsets = [0, 32], sizes = [8, 32], strides = [1, 1]} : vector<8x256xbf16> to vector<8x32xbf16>
    %cst_49 = arith.constant dense<0.000000e+00> : vector<8x32xf32>
    %143 = tpu.matmul %141, %142, %cst_49 {dimension_numbers = #tpu.dot_dimension_numbers<[1], [0], [0], [1], [0, 0, 1, 1], [], []>} : vector<8x8xbf16>, vector<8x32xbf16>, vector<8x32xf32> -> vector<8x32xf32>
    %c0_50 = arith.constant 0 : index
    %c32 = arith.constant 32 : index
    %144 = vector.load %arg18[%c0_50, %c32] : memref<8x256xf32, #tpu.memory_space<vmem>>, vector<8x32xf32>
    tpu.vector_store %arg18[%c0_50, %c32], %143 {strides = array<i32>} : memref<8x256xf32, #tpu.memory_space<vmem>>, vector<8x32xf32>,
    %145 = vector.extract_strided_slice %95 {offsets = [0, 2], sizes = [8, 1], strides = [1, 1]} : vector<8x8xf32> to vector<8x1xf32>
    %146 = vector.extract_strided_slice %98 {offsets = [2, 0], sizes = [1, 8], strides = [1, 1]} : vector<8x8xf32> to vector<1x8xf32>
    %147 = vector.broadcast %145 : vector<8x1xf32> to vector<8x8xf32>
    %148 = vector.broadcast %146 : vector<1x8xf32> to vector<8x8xf32>
    %149 = arith.subf %147, %148 : vector<8x8xf32>
    %150 = arith.addf %149, %120 : vector<8x8xf32>
    %151 = math.exp %150 : vector<8x8xf32>
    %152 = arith.mulf %151, %116 : vector<8x8xf32>
    %153 = arith.truncf %152 : vector<8x8xf32> to vector<8x8xbf16>
    %154 = vector.extract_strided_slice %105 {offsets = [0, 64], sizes = [8, 32], strides = [1, 1]} : vector<8x256xbf16> to vector<8x32xbf16>
    %cst_51 = arith.constant dense<0.000000e+00> : vector<8x32xf32>
    %155 = tpu.matmul %153, %154, %cst_51 {dimension_numbers = #tpu.dot_dimension_numbers<[1], [0], [0], [1], [0, 0, 1, 1], [], []>} : vector<8x8xbf16>, vector<8x32xbf16>, vector<8x32xf32> -> vector<8x32xf32>
    %c0_52 = arith.constant 0 : index
    %c64 = arith.constant 64 : index
    %156 = vector.load %arg18[%c0_52, %c64] : memref<8x256xf32, #tpu.memory_space<vmem>>, vector<8x32xf32>
    tpu.vector_store %arg18[%c0_52, %c64], %155 {strides = array<i32>} : memref<8x256xf32, #tpu.memory_space<vmem>>, vector<8x32xf32>,
    %157 = vector.extract_strided_slice %95 {offsets = [0, 3], sizes = [8, 1], strides = [1, 1]} : vector<8x8xf32> to vector<8x1xf32>
    %158 = vector.extract_strided_slice %98 {offsets = [3, 0], sizes = [1, 8], strides = [1, 1]} : vector<8x8xf32> to vector<1x8xf32>
    %159 = vector.broadcast %157 : vector<8x1xf32> to vector<8x8xf32>
    %160 = vector.broadcast %158 : vector<1x8xf32> to vector<8x8xf32>
    %161 = arith.subf %159, %160 : vector<8x8xf32>
    %162 = arith.addf %161, %120 : vector<8x8xf32>
    %163 = math.exp %162 : vector<8x8xf32>
    %164 = arith.mulf %163, %116 : vector<8x8xf32>
    %165 = arith.truncf %164 : vector<8x8xf32> to vector<8x8xbf16>
    %166 = vector.extract_strided_slice %105 {offsets = [0, 96], sizes = [8, 32], strides = [1, 1]} : vector<8x256xbf16> to vector<8x32xbf16>
    %cst_53 = arith.constant dense<0.000000e+00> : vector<8x32xf32>
    %167 = tpu.matmul %165, %166, %cst_53 {dimension_numbers = #tpu.dot_dimension_numbers<[1], [0], [0], [1], [0, 0, 1, 1], [], []>} : vector<8x8xbf16>, vector<8x32xbf16>, vector<8x32xf32> -> vector<8x32xf32>
    %c0_54 = arith.constant 0 : index
    %c96 = arith.constant 96 : index
    %168 = vector.load %arg18[%c0_54, %c96] : memref<8x256xf32, #tpu.memory_space<vmem>>, vector<8x32xf32>
    tpu.vector_store %arg18[%c0_54, %c96], %167 {strides = array<i32>} : memref<8x256xf32, #tpu.memory_space<vmem>>, vector<8x32xf32>,
    %169 = vector.extract_strided_slice %95 {offsets = [0, 4], sizes = [8, 1], strides = [1, 1]} : vector<8x8xf32> to vector<8x1xf32>
    %170 = vector.extract_strided_slice %98 {offsets = [4, 0], sizes = [1, 8], strides = [1, 1]} : vector<8x8xf32> to vector<1x8xf32>
    %171 = vector.broadcast %169 : vector<8x1xf32> to vector<8x8xf32>
    %172 = vector.broadcast %170 : vector<1x8xf32> to vector<8x8xf32>
    %173 = arith.subf %171, %172 : vector<8x8xf32>
    %174 = arith.addf %173, %120 : vector<8x8xf32>
    %175 = math.exp %174 : vector<8x8xf32>
    %176 = arith.mulf %175, %116 : vector<8x8xf32>
    %177 = arith.truncf %176 : vector<8x8xf32> to vector<8x8xbf16>
    %178 = vector.extract_strided_slice %105 {offsets = [0, 128], sizes = [8, 32], strides = [1, 1]} : vector<8x256xbf16> to vector<8x32xbf16>
    %cst_55 = arith.constant dense<0.000000e+00> : vector<8x32xf32>
    %179 = tpu.matmul %177, %178, %cst_55 {dimension_numbers = #tpu.dot_dimension_numbers<[1], [0], [0], [1], [0, 0, 1, 1], [], []>} : vector<8x8xbf16>, vector<8x32xbf16>, vector<8x32xf32> -> vector<8x32xf32>
    %c0_56 = arith.constant 0 : index
    %c128 = arith.constant 128 : index
    %180 = vector.load %arg18[%c0_56, %c128] : memref<8x256xf32, #tpu.memory_space<vmem>>, vector<8x32xf32>
    tpu.vector_store %arg18[%c0_56, %c128], %179 {strides = array<i32>} : memref<8x256xf32, #tpu.memory_space<vmem>>, vector<8x32xf32>,
    %181 = vector.extract_strided_slice %95 {offsets = [0, 5], sizes = [8, 1], strides = [1, 1]} : vector<8x8xf32> to vector<8x1xf32>
    %182 = vector.extract_strided_slice %98 {offsets = [5, 0], sizes = [1, 8], strides = [1, 1]} : vector<8x8xf32> to vector<1x8xf32>
    %183 = vector.broadcast %181 : vector<8x1xf32> to vector<8x8xf32>
    %184 = vector.broadcast %182 : vector<1x8xf32> to vector<8x8xf32>
    %185 = arith.subf %183, %184 : vector<8x8xf32>
    %186 = arith.addf %185, %120 : vector<8x8xf32>
    %187 = math.exp %186 : vector<8x8xf32>
    %188 = arith.mulf %187, %116 : vector<8x8xf32>
    %189 = arith.truncf %188 : vector<8x8xf32> to vector<8x8xbf16>
    %190 = vector.extract_strided_slice %105 {offsets = [0, 160], sizes = [8, 32], strides = [1, 1]} : vector<8x256xbf16> to vector<8x32xbf16>
    %cst_57 = arith.constant dense<0.000000e+00> : vector<8x32xf32>
    %191 = tpu.matmul %189, %190, %cst_57 {dimension_numbers = #tpu.dot_dimension_numbers<[1], [0], [0], [1], [0, 0, 1, 1], [], []>} : vector<8x8xbf16>, vector<8x32xbf16>, vector<8x32xf32> -> vector<8x32xf32>
    %c0_58 = arith.constant 0 : index
    %c160 = arith.constant 160 : index
    %192 = vector.load %arg18[%c0_58, %c160] : memref<8x256xf32, #tpu.memory_space<vmem>>, vector<8x32xf32>
    tpu.vector_store %arg18[%c0_58, %c160], %191 {strides = array<i32>} : memref<8x256xf32, #tpu.memory_space<vmem>>, vector<8x32xf32>,
    %193 = vector.extract_strided_slice %95 {offsets = [0, 6], sizes = [8, 1], strides = [1, 1]} : vector<8x8xf32> to vector<8x1xf32>
    %194 = vector.extract_strided_slice %98 {offsets = [6, 0], sizes = [1, 8], strides = [1, 1]} : vector<8x8xf32> to vector<1x8xf32>
    %195 = vector.broadcast %193 : vector<8x1xf32> to vector<8x8xf32>
    %196 = vector.broadcast %194 : vector<1x8xf32> to vector<8x8xf32>
    %197 = arith.subf %195, %196 : vector<8x8xf32>
    %198 = arith.addf %197, %120 : vector<8x8xf32>
    %199 = math.exp %198 : vector<8x8xf32>
    %200 = arith.mulf %199, %116 : vector<8x8xf32>
    %201 = arith.truncf %200 : vector<8x8xf32> to vector<8x8xbf16>
    %202 = vector.extract_strided_slice %105 {offsets = [0, 192], sizes = [8, 32], strides = [1, 1]} : vector<8x256xbf16> to vector<8x32xbf16>
    %cst_59 = arith.constant dense<0.000000e+00> : vector<8x32xf32>
    %203 = tpu.matmul %201, %202, %cst_59 {dimension_numbers = #tpu.dot_dimension_numbers<[1], [0], [0], [1], [0, 0, 1, 1], [], []>} : vector<8x8xbf16>, vector<8x32xbf16>, vector<8x32xf32> -> vector<8x32xf32>
    %c0_60 = arith.constant 0 : index
    %c192 = arith.constant 192 : index
    %204 = vector.load %arg18[%c0_60, %c192] : memref<8x256xf32, #tpu.memory_space<vmem>>, vector<8x32xf32>
    tpu.vector_store %arg18[%c0_60, %c192], %203 {strides = array<i32>} : memref<8x256xf32, #tpu.memory_space<vmem>>, vector<8x32xf32>,
    %205 = vector.extract_strided_slice %95 {offsets = [0, 7], sizes = [8, 1], strides = [1, 1]} : vector<8x8xf32> to vector<8x1xf32>
    %206 = vector.extract_strided_slice %98 {offsets = [7, 0], sizes = [1, 8], strides = [1, 1]} : vector<8x8xf32> to vector<1x8xf32>
    %207 = vector.broadcast %205 : vector<8x1xf32> to vector<8x8xf32>
    %208 = vector.broadcast %206 : vector<1x8xf32> to vector<8x8xf32>
    %209 = arith.subf %207, %208 : vector<8x8xf32>
    %210 = arith.addf %209, %120 : vector<8x8xf32>
    %211 = math.exp %210 : vector<8x8xf32>
    %212 = arith.mulf %211, %116 : vector<8x8xf32>
    %213 = arith.truncf %212 : vector<8x8xf32> to vector<8x8xbf16>
    %214 = vector.extract_strided_slice %105 {offsets = [0, 224], sizes = [8, 32], strides = [1, 1]} : vector<8x256xbf16> to vector<8x32xbf16>
    %cst_61 = arith.constant dense<0.000000e+00> : vector<8x32xf32>
    %215 = tpu.matmul %213, %214, %cst_61 {dimension_numbers = #tpu.dot_dimension_numbers<[1], [0], [0], [1], [0, 0, 1, 1], [], []>} : vector<8x8xbf16>, vector<8x32xbf16>, vector<8x32xf32> -> vector<8x32xf32>
    %c0_62 = arith.constant 0 : index
    %c224 = arith.constant 224 : index
    %216 = vector.load %arg18[%c0_62, %c224] : memref<8x256xf32, #tpu.memory_space<vmem>>, vector<8x32xf32>
    tpu.vector_store %arg18[%c0_62, %c224], %215 {strides = array<i32>} : memref<8x256xf32, #tpu.memory_space<vmem>>, vector<8x32xf32>,
    %c0_63 = arith.constant 0 : index
    %c0_64 = arith.constant 0 : index
    %217 = vector.load %arg16[%c0_63, %c0_64] : memref<64x256xf32, #tpu.memory_space<vmem>>, vector<64x256xf32>
    %218 = arith.truncf %74 : vector<8x64xf32> to vector<8x64xbf16>
    %219 = arith.truncf %217 : vector<64x256xf32> to vector<64x256xbf16>
    %cst_65 = arith.constant dense<0.000000e+00> : vector<8x256xf32>
    %220 = tpu.matmul %218, %219, %cst_65 {dimension_numbers = #tpu.dot_dimension_numbers<[1], [0], [0], [1], [0, 0, 1, 1], [], []>} : vector<8x64xbf16>, vector<64x256xbf16>, vector<8x256xf32> -> vector<8x256xf32>
    %c0_66 = arith.constant 0 : index
    %c0_67 = arith.constant 0 : index
    %221 = vector.load %arg18[%c0_66, %c0_67] : memref<8x256xf32, #tpu.memory_space<vmem>>, vector<8x256xf32>
    %222 = arith.mulf %107, %220 : vector<8x256xf32>
    %223 = arith.addf %221, %222 : vector<8x256xf32>
    %c0_68 = arith.constant 0 : index
    %c0_69 = arith.constant 0 : index
    %c0_70 = arith.constant 0 : index
    %224 = vector.load %arg9[%c0_68, %c0_69, %c0_70] : memref<1x1x256xf32, #tpu.memory_space<vmem>>, vector<1x1x256xf32>
    %225 = vector.shape_cast %224 : vector<1x1x256xf32> to vector<1x256xf32>
    %226 = vector.broadcast %225 : vector<1x256xf32> to vector<8x256xf32>
    %227 = arith.mulf %226, %72 : vector<8x256xf32>
    %228 = arith.addf %223, %227 : vector<8x256xf32>
    %229 = vector.broadcast %113 : vector<1x256xf32> to vector<64x256xf32>
    %230 = arith.mulf %229, %217 : vector<64x256xf32>
    %231 = arith.truncf %73 : vector<8x64xf32> to vector<8x64xbf16>
    %232 = arith.mulf %111, %104 : vector<8x256xf32>
    %233 = arith.truncf %232 : vector<8x256xf32> to vector<8x256xbf16>
    %cst_71 = arith.constant dense<0.000000e+00> : vector<64x256xf32>
    %234 = tpu.matmul %231, %233, %cst_71 {dimension_numbers = #tpu.dot_dimension_numbers<[0], [0], [1], [1], [0, 1, 1, 1], [], []>} : vector<8x64xbf16>, vector<8x256xbf16>, vector<64x256xf32> -> vector<64x256xf32>
    %235 = arith.addf %230, %234 : vector<64x256xf32>
    %c0_72 = arith.constant 0 : index
    %c0_73 = arith.constant 0 : index
    %236 = vector.load %arg16[%c0_72, %c0_73] : memref<64x256xf32, #tpu.memory_space<vmem>>, vector<64x256xf32>
    tpu.vector_store %arg16[%c0_72, %c0_73], %235 {strides = array<i32>} : memref<64x256xf32, #tpu.memory_space<vmem>>, vector<64x256xf32>,
    %237 = arith.negf %10 : vector<8x256xf32>
    %238 = math.exp %237 : vector<8x256xf32>
    %cst_74 = arith.constant 1.000000e+00 : f32
    %239 = vector.broadcast %cst_74 : f32 to vector<8x256xf32>
    %240 = arith.addf %239, %238 : vector<8x256xf32>
    %241 = arith.divf %239, %240 : vector<8x256xf32>
    %242 = arith.mulf %10, %241 : vector<8x256xf32>
    %243 = arith.mulf %228, %242 : vector<8x256xf32>
    %244 = arith.mulf %243, %243 : vector<8x256xf32>
    %cst_75 = arith.constant dense<0.000000e+00> : vector<8xf32>
    %245 = vector.multi_reduction <add>, %244, %cst_75 [1] : vector<8x256xf32> to vector<8xf32>
    %246 = vector.shape_cast %245 : vector<8xf32> to vector<8x1xf32>
    %cst_76 = arith.constant 2.560000e+02 : f32
    %247 = vector.broadcast %cst_76 : f32 to vector<8x1xf32>
    %248 = arith.divf %246, %247 : vector<8x1xf32>
    %cst_77 = arith.constant 9.99999974E-6 : f32
    %249 = vector.broadcast %cst_77 : f32 to vector<8x1xf32>
    %250 = arith.addf %248, %249 : vector<8x1xf32>
    %251 = math.rsqrt %250 : vector<8x1xf32>
    %252 = vector.broadcast %251 : vector<8x1xf32> to vector<8x256xf32>
    %253 = arith.mulf %243, %252 : vector<8x256xf32>
    %c0_78 = arith.constant 0 : index
    %c0_79 = arith.constant 0 : index
    %c0_80 = arith.constant 0 : index
    %254 = vector.load %arg10[%c0_78, %c0_79, %c0_80] : memref<1x1x256xf32, #tpu.memory_space<vmem>>, vector<1x1x256xf32>
    %255 = vector.shape_cast %254 : vector<1x1x256xf32> to vector<1x256xf32>
    %256 = vector.broadcast %255 : vector<1x256xf32> to vector<8x256xf32>
    %257 = arith.mulf %253, %256 : vector<8x256xf32>
    %258 = arith.truncf %257 : vector<8x256xf32> to vector<8x256xbf16>
    %c0_81 = arith.constant 0 : index
    %c0_82 = arith.constant 0 : index
    %c0_83 = arith.constant 0 : index
    %259 = vector.load %arg11[%c0_81, %c0_82, %c0_83] : memref<1x256x128xbf16, #tpu.memory_space<vmem>>, vector<1x256x128xbf16>
    %260 = vector.shape_cast %259 : vector<1x256x128xbf16> to vector<256x128xbf16>
    %cst_84 = arith.constant dense<0.000000e+00> : vector<8x128xf32>
    %261 = tpu.matmul %258, %260, %cst_84 {dimension_numbers = #tpu.dot_dimension_numbers<[1], [0], [0], [1], [0, 0, 1, 1], [], []>} : vector<8x256xbf16>, vector<256x128xbf16>, vector<8x128xf32> -> vector<8x128xf32>
    %262 = arith.addf %261, %5 : vector<8x128xf32>
    %c0_85 = arith.constant 0 : index
    %c0_86 = arith.constant 0 : index
    %c0_87 = arith.constant 0 : index
    %263 = vector.load %arg15[%c0_85, %c0_86, %c0_87] : memref<1x8x128xf32, #tpu.memory_space<vmem>>, vector<1x8x128xf32>
    %264 = vector.shape_cast %263 : vector<1x8x128xf32> to vector<8x128xf32>
    %265 = vector.shape_cast %262 : vector<8x128xf32> to vector<1x8x128xf32>
    tpu.vector_store %arg15[%c0_85, %c0_86, %c0_87], %265 {strides = array<i32>} : memref<1x8x128xf32, #tpu.memory_space<vmem>>, vector<1x8x128xf32>,
    return
  }
  func.func @transform_0(%arg0: i32, %arg1: i32, %arg2: i32) -> (i32, i32, i32) {
    %c0_i32 = arith.constant 0 : i32
    %0 = arith.muli %arg0, %c0_i32 : i32
    %c2_i32 = arith.constant 2 : i32
    %1 = arith.muli %c2_i32, %arg0 : i32
    %c1_i32 = arith.constant 1 : i32
    %2 = arith.subi %c1_i32, %1 : i32
    %3 = arith.muli %2, %arg2 : i32
    %4 = arith.addi %0, %3 : i32
    %c0_i32_0 = arith.constant 0 : i32
    %c0_i32_1 = arith.constant 0 : i32
    return %arg1, %4, %c0_i32_0 : i32, i32, i32
  }
  func.func @transform_1(%arg0: i32, %arg1: i32, %arg2: i32) -> (i32, i32, i32) {
    %c0_i32 = arith.constant 0 : i32
    %c0_i32_0 = arith.constant 0 : i32
    %c0_i32_1 = arith.constant 0 : i32
    return %arg0, %c0_i32, %c0_i32_0 : i32, i32, i32
  }
  func.func @transform_2(%arg0: i32, %arg1: i32, %arg2: i32) -> (i32, i32, i32) {
    %c0_i32 = arith.constant 0 : i32
    %c0_i32_0 = arith.constant 0 : i32
    %c0_i32_1 = arith.constant 0 : i32
    return %arg0, %c0_i32, %c0_i32_0 : i32, i32, i32
  }
  func.func @transform_3(%arg0: i32, %arg1: i32, %arg2: i32) -> (i32, i32, i32) {
    %c0_i32 = arith.constant 0 : i32
    %c0_i32_0 = arith.constant 0 : i32
    %c0_i32_1 = arith.constant 0 : i32
    return %arg0, %c0_i32, %c0_i32_0 : i32, i32, i32
  }
  func.func @transform_4(%arg0: i32, %arg1: i32, %arg2: i32) -> (i32, i32, i32) {
    %c0_i32 = arith.constant 0 : i32
    %c0_i32_0 = arith.constant 0 : i32
    %c0_i32_1 = arith.constant 0 : i32
    return %arg0, %c0_i32, %c0_i32_0 : i32, i32, i32
  }
  func.func @transform_5(%arg0: i32, %arg1: i32, %arg2: i32) -> (i32, i32, i32) {
    %c0_i32 = arith.constant 0 : i32
    %c0_i32_0 = arith.constant 0 : i32
    %c0_i32_1 = arith.constant 0 : i32
    return %arg0, %c0_i32, %c0_i32_0 : i32, i32, i32
  }
  func.func @transform_6(%arg0: i32, %arg1: i32, %arg2: i32) -> (i32, i32, i32) {
    %c0_i32 = arith.constant 0 : i32
    %c0_i32_0 = arith.constant 0 : i32
    %c0_i32_1 = arith.constant 0 : i32
    return %arg0, %c0_i32, %c0_i32_0 : i32, i32, i32
  }
  func.func @transform_7(%arg0: i32, %arg1: i32, %arg2: i32) -> (i32, i32, i32) {
    %c0_i32 = arith.constant 0 : i32
    %c0_i32_0 = arith.constant 0 : i32
    %c0_i32_1 = arith.constant 0 : i32
    return %arg0, %c0_i32, %c0_i32_0 : i32, i32, i32
  }
  func.func @transform_8(%arg0: i32, %arg1: i32, %arg2: i32) -> (i32, i32, i32) {
    %c0_i32 = arith.constant 0 : i32
    %c0_i32_0 = arith.constant 0 : i32
    %c0_i32_1 = arith.constant 0 : i32
    return %arg0, %c0_i32, %c0_i32_0 : i32, i32, i32
  }
  func.func @transform_9(%arg0: i32, %arg1: i32, %arg2: i32) -> (i32, i32) {
    %c0_i32 = arith.constant 0 : i32
    %c0_i32_0 = arith.constant 0 : i32
    %c0_i32_1 = arith.constant 0 : i32
    return %c0_i32, %c0_i32_0 : i32, i32
  }
  func.func @transform_10(%arg0: i32, %arg1: i32, %arg2: i32) -> (i32, i32, i32) {
    %c0_i32 = arith.constant 0 : i32
    %c0_i32_0 = arith.constant 0 : i32
    %c0_i32_1 = arith.constant 0 : i32
    return %arg0, %c0_i32, %c0_i32_0 : i32, i32, i32
  }
  func.func @transform_11(%arg0: i32, %arg1: i32, %arg2: i32) -> (i32, i32, i32) {
    %c1_i32 = arith.constant 1 : i32
    %0 = arith.subi %c1_i32, %arg0 : i32
    %c0_i32 = arith.constant 0 : i32
    %c0_i32_0 = arith.constant 0 : i32
    %c0_i32_1 = arith.constant 0 : i32
    return %0, %c0_i32, %c0_i32_0 : i32, i32, i32
  }
  func.func @transform_12(%arg0: i32, %arg1: i32, %arg2: i32) -> (i32, i32, i32) {
    %c0_i32 = arith.constant 0 : i32
    %0 = arith.muli %arg0, %c0_i32 : i32
    %c2_i32 = arith.constant 2 : i32
    %1 = arith.muli %c2_i32, %arg0 : i32
    %c1_i32 = arith.constant 1 : i32
    %2 = arith.subi %c1_i32, %1 : i32
    %3 = arith.muli %2, %arg2 : i32
    %4 = arith.addi %0, %3 : i32
    %c0_i32_0 = arith.constant 0 : i32
    return %arg1, %4, %arg0 : i32, i32, i32
  }
}

</mosaic_0001>

<bundles_post_ra>
// kernel: _lambda_.1
= control target key start
LH: loop header
LB: loop body
LE: loop exit
PB: predicated region body
PF: predicated region fallthrough
CT: control target
= control target key end

     0   :  { %s4962_s0 = inlined_call_operand.hbm [shape: f32[2,8,128], index: 0, kind: input, shape index: {}]   ;;  %s4963_s1 = inlined_call_operand.hbm [shape: bf16[2,128,768], index: 1, kind: input, shape index: {}]   ;;  %s4964_s2 = inlined_call_operand.hbm [shape: f32[2,4,384], index: 2, kind: input, shape index: {}]   ;;  %s4965_s3 = inlined_call_operand.vmem [shape: f32[2,1,384], index: 3, kind: input, shape index: {}]   ;;  %s4966_s4 = inlined_call_operand.vmem [shape: f32[2,1,8], index: 4, kind: input, shape index: {}]   ;;  %s4967_s5 = inlined_call_operand.hbm [shape: f32[2,1,8], index: 5, kind: input, shape index: {}]   ;;  %s4968_s6 = inlined_call_operand.vmem [shape: f32[2,1,256], index: 6, kind: input, shape index: {}, may-alias: {6,7}]   ;;  %s4969_s7 = inlined_call_operand.vmem [shape: f32[2,1,256], index: 7, kind: input, shape index: {}, may-alias: {6,7}]   ;;  %s4970_s8 = inlined_call_operand.hbm [shape: bf16[2,256,128], index: 8, kind: input, shape index: {}]   ;;  %s4971_s9 = inlined_call_operand.hbm [shape: f32[8,256], index: 9, kind: input, shape index: {}]   ;;  %s4972_s10 = inlined_call_operand.hbm [shape: f32[2,8,8], index: 10, kind: input, shape index: {}, may-alias: {10,11}]   ;;  %s4973_s11 = inlined_call_operand.hbm [shape: f32[2,8,8], index: 11, kind: input, shape index: {}, may-alias: {10,11}]   ;;  %s4974_s12 = inlined_call_operand.hbm [shape: f32[2,8,256], index: 12, kind: output, shape index: {}]  }
   0x1   :  { %4996 = sst [smem:[#allocation45_spill]] %s4962_s0 }
   0x2   :  { %4997 = sst [smem:[#allocation46_spill]] %s4963_s1 }
   0x3   :  { %4998 = sst [smem:[#allocation47_spill]] %s4964_s2 }
   0x4   :  { %4999 = sst [smem:[#allocation48_spill]] %s4965_s3 }
   0x5   :  { %5000 = sst [smem:[#allocation49_spill]] %s4966_s4 }
   0x6   :  { %5001 = sst [smem:[#allocation50_spill]] %s4967_s5 }
   0x7   :  { %5002 = sst [smem:[#allocation51_spill]] %s4968_s6 }
   0x8   :  { %5003 = sst [smem:[#allocation52_spill]] %s4969_s7 }
   0x9   :  { %5004 = sst [smem:[#allocation53_spill]] %s4970_s8 }
   0xa   :  { %5005 = sst [smem:[#allocation54_spill]] %s4971_s9 }
   0xb   :  { %5006 = sst [smem:[#allocation55_spill]] %s4972_s10 }
   0xc   :  { %5007 = sst [smem:[#allocation56_spill]] %s4973_s11 }
   0xd   :  { %5008 = sst [smem:[#allocation57_spill]] %s4974_s12 }
   0xe   :  { %17 = vsyncpa [#allocation6], 0 }
   0xf   :  { %19 = vsyncpa [#allocation6 + $0x1], 0 }
  0x10   :  { %20 = vsyncpa [#allocation9], 0 }
  0x11   :  { %22 = vsyncpa [#allocation9 + $0x1], 0 }
  0x12   :  { %23 = vsyncpa [#allocation12], 0 }
  0x13   :  { %25 = vsyncpa [#allocation12 + $0x1], 0 }
  0x14   :  { %26 = vsyncpa [#allocation15], 0 }
  0x15   :  { %27 = vsyncpa [#allocation7], 0 }
  0x16   :  { %29 = vsyncpa [#allocation7 + $0x1], 0  ;;  %s4116_s21 = smov 0   ;;  %s4118_s22 = smov 0  }
  0x17   :  { %s4120_s23 = smov 0   ;;  %s4122_s24 = smov 0  }
  0x18   :  { %s4124_s25 = smov 0   ;;  %s4126_s26 = smov 0  }
  0x19   :  { %s4128_s27 = smov 0   ;;  %s4130_s28 = smov 0  }
  0x1a   :  { %s4132_s29 = smov 0   ;;  %s4134_s30 = smov 0  }
  0x1b   :  { %s4136_s13 = smov 0   ;;  %s4138_s14 = smov 0  }
  0x1c   :  { %s4140_s15 = smov 0   ;;  %s4142_s16 = smov 0  }
  0x1d   :  { %s4144_s17 = smov 0   ;;  %s4146_s18 = smov 0  }
  0x1e   :  { %s4148_s19 = smov 0  }
  0x1f LB: > { %5009 = sst [smem:[#allocation26_spill]] %s3967_s21  ;;  %p77_p0 = scmp.eq.s32.totalorder %s4031_s19, 0  ;;  %s4031_s19 = sphi %s4148_s19, %s35_s19   ;;  %s4027_s18 = sphi %s4146_s18, %s5089_s18   ;;  %s4023_s17 = sphi %s4144_s17, %s5080_s17   ;;  %s4019_s16 = sphi %s4142_s16, %s5088_s16   ;;  %s4015_s15 = sphi %s4140_s15, %s5079_s15   ;;  %s4011_s14 = sphi %s4138_s14, %s5078_s14   ;;  %s4007_s13 = sphi %s4136_s13, %s5087_s13   ;;  %s4003_s30 = sphi %s4134_s30, %s5086_s30   ;;  %s3999_s29 = sphi %s4132_s29, %s5076_s29   ;;  %s3995_s28 = sphi %s4130_s28, %s5085_s28   ;;  %s3991_s27 = sphi %s4128_s27, %s5084_s27   ;;  %s3987_s26 = sphi %s4126_s26, %s5083_s26   ;;  %s3983_s25 = sphi %s4124_s25, %s5074_s25   ;;  %s3979_s24 = sphi %s4122_s24, %s5073_s24   ;;  %s3975_s23 = sphi %s4120_s23, %s5072_s23   ;;  %s3971_s22 = sphi %s4118_s22, %s5071_s22   ;;  %s3967_s21 = sphi %s4116_s21, %s5070_s21  }
  0x20   : > { %5010 = sst [smem:[#allocation27_spill]] %s3971_s22  ;;  %p102_p1 = scmp.ne.s32.totalorder %s3999_s29, %s3995_s28 }
  0x21   : > { %5011 = sst [smem:[#allocation28_spill]] %s3975_s23  ;;  %p4984_p2 = scmp.lt.s32.totalorder %s4031_s19, 4 }
  0x22   : > { %5012 = sst [smem:[#allocation29_spill]] %s3979_s24  ;;  %p104_p3 = por %p102_p1, %p77_p0 }
  0x23   : > { %5013 = sst [smem:[#allocation30_spill]] %s3983_s25  ;;  %s4208_s20 = sand.u32 1, %s4031_s19  }
  0x24   : > { %5014 = sst [smem:[#allocation31_spill]] %s3987_s26  ;;  %s4211_s12 = sand.u32 1, %s3999_s29  }
  0x25   : > { %5015 = sst [smem:[#allocation32_spill]] %s3999_s29  ;;  %p4216_p4 = pnand %p4984_p2, %p104_p3 }
  0x26   : > { %5016 = sst [smem:[#allocation33_spill]] %s4011_s14  ;;  %s3312_s6 = smul.u32 384, %s4027_s18 }
  0x27   : > { %5017 = sst [smem:[#allocation34_spill]] %s4015_s15  ;;  %s3311_s15 = smul.u32 384, %s4211_s12 }
  0x28   : > { %5018 = sst [smem:[#allocation35_spill]] %s4019_s16  ;;  %s4225_s25 = scalar_lea.sflag [#allocation9], %s4208_s20 }
  0x29   : > { %5019 = sst [smem:[#allocation36_spill]] %s4023_s17  ;;  %s464_s11 = scalar_lea.vmem [#allocation8], %s3311_s15 }
  0x2a   : > { %s5021_s1 = sld [smem:[#allocation46_spill]]  ;;  %s472_s10 = sshll.u32 %s464_s11, 4  ;;  %s473_s10 = int_to_ptr.vmem [resolvable:$true] %s472_s10 }
  0x2b   : > { %s4033_s26 = smov 384   ;;  %s4034_s8 = smov 24  }
  0x2c   : > { %s2917_s3 = sadd.s32 4294967294, %s4031_s19   ;;  %s50_s4 = sadd.s32 1, %s4023_s17 }
  0x2d   : > { %p52_p5 = scmp.ge.s32.totalorder %s50_s4, 2  ;;  %s69_s11 = sadd.s32 1, %s4011_s14 }
  0x2e   : > { %p76_p6 = scmp.ne.s32.totalorder %s4011_s14, %s4007_s13  ;;  %p82_p10 = scmp.ne.s32.totalorder %s4007_s13, %s4003_s30 }
  0x2f   : > { %s5091_s4 = smov (%p52_p5, %s50_s4), 0  ;;  %p398_p13 = scmp.ne.s32.totalorder %s3975_s23, %s3971_s22 }
  0x30   : > { %s469_s16 = scalar_lea.hbm %s5021_s1, %s3312_s6  ;;  %s54_s6 = sadd.s32 1, %s4027_s18 }
  0x31   : > { %s470_s24 = sshll.u32 %s469_s16, 4  ;;  %5022 = sst [smem:[#allocation37_spill]] %s5091_s4  ;;  %s471_s24 = int_to_ptr.hbm [resolvable:$true] %s470_s24 }
  0x32   : > { %3348 = dma.hbm_to_vmem [thread:$0]  (!%p4216_p4), %s471_s24, 6144, %s473_s10, %s4225_s25, %s4033_s26, %s4033_s26, %s4034_s8  }
  0x33   : > { %s5093_s6 = smov (!%p52_p5, %s54_s6), %s4027_s18  ;;  %s64_s15 = ssub.s32 %s4023_s17, %s5091_s4 }
  0x34   : > { %p4243_p7 = por %p77_p0, %p76_p6  ;;  %p56_p8 = scmp.ge.s32.totalorder %s5093_s6, 2 }
  0x35   : > { %p67_p9 = scmp.eq.s32.totalorder %s64_s15, 0  ;;  %s95_s10 = sadd.s32 1, %s3999_s29 }
  0x36   : > { %s5095_s6 = smov (%p56_p8, %s5093_s6), 0  ;;  %s388_s16 = sadd.s32 1, %s3975_s23 }
  0x37   : > { %5024 = sst [smem:[#allocation38_spill]] %s5095_s6  ;;  %s92_s26 = ssub.s32 %s4027_s18, %s5095_s6 }
  0x38   : > { %s4253_s24 = scalar_select %p67_p9, %s4011_s14, %s69_s11  }
  0x39   : > { %p93_p11 = scmp.eq.s32.totalorder %s92_s26, 0  ;;  %s385_s1 = sor.u32 %s92_s26, %s64_s15 }
  0x3a   : > { %5025 = sst [smem:[#allocation39_spill]] %s4253_s24  ;;  %p386_p12 = scmp.eq.s32.totalorder %s385_s1, 0 }
  0x3b   : > { %s4261_s4 = scalar_select %p93_p11, %s3999_s29, %s95_s10  }
  0x3c   : > { %s4264_s9 = scalar_select %p386_p12, %s3975_s23, %s388_s16  }
  0x3d   : > { %5026 = sst [smem:[#allocation40_spill]] %s4261_s4  ;;  %p404_p1 = scmp.ne.s32.totalorder %s3971_s22, %s3967_s21 }
  0x3e   : > { %5027 = sst [smem:[#allocation41_spill]] %s4264_s9  ;;  %p405_p3 = scmp.eq.s32.totalorder %s2917_s3, 3 }
  0x3f   : > { %s439_s11 = sand.u32 1, %s4011_s14   ;;  %s2927_s1 = sshll.u32 %s4023_s17, 3 }
  0x40   : > { %p4269_p5 = por %p405_p3, %p404_p1  ;;  %s2925_s15 = sshll.u32 %s439_s11, 3 }
  0x41   : > { %s5030_s0 = sld [smem:[#allocation45_spill]]  ;;  %s441_s10 = scalar_lea.vmem [#allocation5], %s2925_s15 }
  0x42   : > { %s5028_s24 = scalar_select %p4269_p5, 1, 0 }
  0x43   : > { %s453_s16 = sshll.u32 %s441_s10, 4  ;;  %p3343_p6 = pnand %p4984_p2, %p4243_p7  ;;  %s454_s16 = int_to_ptr.vmem [resolvable:$true] %s453_s16 }
  0x44   : > { %5029 = sst [smem:[#allocation42_spill]] %s5028_s24  ;;  %s3313_s3 = smul.u32 12, %s4211_s12 }
  0x45   : > { %s3314_s14 = smul.u32 12, %s4027_s18  ;;  %s4983_s11 = scalar_lea.sflag [#allocation6], %s4208_s20 }
  0x46   : > { %s5031_s2 = sld [smem:[#allocation47_spill]]  ;;  %s486_s26 = scalar_lea.vmem [#allocation10], %s3313_s3 }
  0x47   : > { %s449_s5 = scalar_lea.hbm %s5030_s0, %s2927_s1  ;;  %s495_s8 = sshll.u32 %s486_s26, 4  ;;  %s496_s8 = int_to_ptr.vmem [resolvable:$true] %s495_s8 }
  0x48   : > { %s451_s4 = sshll.u32 %s449_s5, 4  ;;  %s518_s6 = scalar_lea.vmem [#allocation11], %s4211_s12  ;;  %s452_s4 = int_to_ptr.hbm [resolvable:$true] %s451_s4 }
  0x49   : > { %3345 = dma.hbm_to_vmem [thread:$0]  (!%p3343_p6), %s452_s4, 128, %s454_s16, %s4983_s11  }
  0x4a   : > { %s5032_s16 = sld [smem:[#allocation50_spill]]  ;;  %s525_s15 = sshll.u32 %s518_s6, 4  ;;  %s526_s15 = int_to_ptr.vmem [resolvable:$true] %s525_s15 }
  0x4b   : > { %s4985_s3 = scalar_lea.sflag [#allocation12], %s4208_s20  ;;  %p108_p7 = scmp.ne.s32.totalorder %s3995_s28, %s3991_s27 }
  0x4c   : > { %s491_s1 = scalar_lea.hbm %s5031_s2, %s3314_s14  ;;  %p2922_p11 = scmp.ge.s32.totalorder %s4031_s19, 1 }
  0x4d   : > { %s493_s5 = sshll.u32 %s491_s1, 4  ;;  %s4303_s1 = sadd.s32 4294967295, %s4031_s19   ;;  %s494_s5 = int_to_ptr.hbm [resolvable:$true] %s493_s5 }
  0x4e   : > { %3351 = dma.hbm_to_vmem [thread:$0]  (!%p4216_p4), %s494_s5, 192, %s496_s8, %s4225_s25  }
  0x4f   : > { %p83_p8 = scmp.eq.s32.totalorder %s4303_s1, 0  ;;  %p399_p9 = scmp.eq.s32.totalorder %s4303_s1, 3 }
  0x50   : > { %s521_s11 = scalar_lea.hbm %s5032_s16, %s4027_s18  ;;  %p412_p12 = scmp.lt.s32.totalorder %s4031_s19, 5 }
  0x51   : > { %s523_s14 = sshll.u32 %s521_s11, 4  ;;  %p4316_p1 = por %p83_p8, %p82_p10  ;;  %s524_s14 = int_to_ptr.hbm [resolvable:$true] %s523_s14 }
  0x52   : > { %3354 = dma.hbm_to_vmem [thread:$0]  (!%p4216_p4), %s524_s14, 16, %s526_s15, %s4985_s3  }
  0x53   : > { %p4322_p3 = por %p108_p7, %p83_p8  ;;  %p4329_p6 = por %p399_p9, %p398_p13 }
  0x54   : > { %p4333_p2 = pnand %p2922_p11, %p412_p12  ;;  %s5039_s10 = sld [smem:[#allocation54_spill]] }
  0x55   : > { %s5034_s5 = scalar_select %p4322_p3, 1, 0 }
  0x56   : > { %s5036_s26 = scalar_select %p4329_p6, 1, 0 }
  0x57   : > { %5035 = sst [smem:[#allocation43_spill]] %s5034_s5  ;;  %p3338_p10 = pneg %p4333_p2 }
  0x58   : > { %5037 = sst [smem:[#allocation44_spill]] %s5036_s26  ;;  %s2930_s16 = sshll.u32 %s4211_s12, 7 }
  0x59   : > { %s4035_s14 = smov [#allocation14]   ;;  %p3339_p13 = pnand %p3338_p10, %p83_p8 }
  0x5a   : > { %s424_s4 = sshll.u32 %s5039_s10, 4  ;;  %s426_s6 = sshll.u32 %s4035_s14, 4  ;;  %s425_s4 = int_to_ptr.hbm [resolvable:$true] %s424_s4  ;;  %s427_s6 = int_to_ptr.vmem [resolvable:$true] %s426_s6 }
  0x5b   : > { %s3246_s15 = sshll.u32 %s4027_s18, 7  ;;  %s5040_s30 = sld [smem:[#allocation53_spill]] }
  0x5c   : > { %3341 = dma.hbm_to_vmem [thread:$0]  (!%p3339_p13), %s425_s4, 256, %s427_s6, [#allocation15]  }
  0x5d   : > { %s550_s10 = scalar_lea.vmem [#allocation13], %s2930_s16  ;;  %s5041_s29 = sld [smem:[#allocation38_spill]] }
  0x5e   : > { %s558_s2 = sshll.u32 %s550_s10, 4  ;;  %s5042_s9 = sld [smem:[#allocation31_spill]]  ;;  %s559_s2 = int_to_ptr.vmem [resolvable:$true] %s558_s2 }
  0x5f   : > { %s2933_s14 = sshll.u32 %s4211_s12, 3  ;;  %s5043_s23 = sld [smem:[#allocation30_spill]] }
  0x60   : > { %s4036_s24 = smov 64   ;;  %s4037_s21 = smov 4  }
  0x61   : > { %s555_s8 = scalar_lea.hbm %s5040_s30, %s3246_s15  ;;  %s5044_s4 = scalar_lea.sflag [#allocation12], %s4208_s20 }
  0x62   : > { %s556_s17 = sshll.u32 %s555_s8, 4  ;;  %s5045_s6 = sld [smem:[#allocation29_spill]]  ;;  %s557_s17 = int_to_ptr.hbm [resolvable:$true] %s556_s17 }
  0x63   : > { %3357 = dma.hbm_to_vmem [thread:$0]  (!%p4216_p4), %s557_s17, 2048, %s559_s2, %s5044_s4, %s4036_s24, %s4036_s24, %s4037_s21  }
  0x64   : > { %s2934_s0 = sshll.u32 %s4027_s18, 3  ;;  %s5046_s15 = sld [smem:[#allocation55_spill]] }
  0x65   : > { %s572_s8 = scalar_lea.vmem [#allocation16], %s2933_s14  ;;  %s5047_s26 = scalar_lea.sflag [#allocation6], %s4208_s20 }
  0x66   : > { %s580_s12 = sshll.u32 %s572_s8, 4  ;;  %s347_s22 = ssub.s32 1, %s4027_s18  ;;  %s581_s12 = int_to_ptr.vmem [resolvable:$true] %s580_s12 }
  0x67   : > { %s348_s5 = ssub.s32 1, %s5041_s29  ;;  %s352_s2 = sadd.s32 1, %s5042_s9 }
  0x68   : > { %s349_s21 = ssub.s32 %s347_s22, %s348_s5  ;;  %p359_p7 = scmp.ne.s32.totalorder %s5042_s9, %s5043_s23 }
  0x69   : > { %p350_p9 = scmp.eq.s32.totalorder %s349_s21, 0  ;;  %p365_p11 = scmp.ne.s32.totalorder %s5043_s23, %s5045_s6 }
  0x6a   : > { %s576_s30 = scalar_lea.hbm %s5046_s15, %s2934_s0  ;;  %p361_p12 = por %p359_p7, %p77_p0 }
  0x6b   : > { %s578_s10 = sshll.u32 %s576_s30, 4  ;;  %s589_s17 = sand.u32 1, %s5042_s9   ;;  %s579_s10 = int_to_ptr.hbm [resolvable:$true] %s578_s10 }
  0x6c   : > { %3360 = dma.hbm_to_vmem [thread:$0]  (!%p4216_p4), %s579_s10, 128, %s581_s12, %s5047_s26  }
  0x6d   : > { %s5097_s9 = smov (!%p350_p9, %s5042_s9), %s352_s2  ;;  %p4377_p10 = por %p365_p11, %p83_p8 }
  0x6e   : > { %s2935_s7 = sshll.u32 %s589_s17, 3  ;;  %s2936_s20 = sshll.u32 %s347_s22, 3 }
  0x6f   : > { %s5049_s5 = sld [smem:[#allocation56_spill]]  ;;  %s591_s4 = scalar_lea.vmem [#allocation17], %s2935_s7 }
  0x70   : > { %s600_s0 = sshll.u32 %s591_s4, 4  ;;  %p5050_p0 = scmp.lt.s32.totalorder %s4031_s19, 4  ;;  %s601_s0 = int_to_ptr.vmem [resolvable:$true] %s600_s0 }
  0x71   : > { %s611_s23 = sand.u32 (!%p4333_p2), 1, %s4303_s1   ;;  %s613_s22 = sand.u32 (!%p4333_p2), 1, %s4007_s13  }
  0x72   : > { %p3361_p4 = pnand %p5050_p0, %p361_p12  ;;  %s4391_s6 = sshll.u32 (!%p4333_p2), %s613_s22, 3 }
  0x73   : > { %609 = sbr.rel (%p4333_p2) target bundleno = 1351 (0x547), region = 68  ;;  %s612_s16 = scalar_lea.sflag (!%p4333_p2), [#allocation6], %s611_s23 }
  0x74   : > { %s615_s15 = scalar_lea.vmem (!%p4333_p2), [#allocation5], %s4391_s6 }
  0x75   : > { %s596_s14 = scalar_lea.hbm %s5049_s5, %s2936_s20 }
  0x76   : > { %s598_s3 = sshll.u32 %s596_s14, 4  ;;  %s599_s3 = int_to_ptr.hbm [resolvable:$true] %s598_s3 }
  0x77   : > { %3363 = dma.hbm_to_vmem [thread:$0]  (!%p3361_p4), %s599_s3, 128, %s601_s0, %s4225_s25  }
  0x78   : > { %3938 = dma.done.wait (%p4316_p1), %s612_s16, 128  }
  0x79   : > { %3940 = vsyncadd (%p4316_p1), %s612_s16, 4294967168  ;;  %s4399_s30 = sand.u32 1, %s3995_s28   ;;  %s622_s8 = scalar_lea.sflag [#allocation9], %s611_s23 }
  0x7a   : > { %s3315_s27 = smul.u32 384, %s4399_s30 }
  0x7c   : > { %s4402_s12 = scalar_lea.vmem [#allocation8], %s3315_s27 }
  0x7d   : > { %3942 = dma.done.wait (%p4322_p3), %s622_s8, 6336  }
  0x7e   : > { %3944 = vsyncadd (%p4322_p3), %s622_s8, 4294960960  ;;  %s3316_s10 = smul.u32 12, %s4399_s30  ;;  %s642_s2 = scalar_lea.sflag [#allocation12], %s611_s23 }
  0x7f   : > { %s644_s21 = scalar_lea.vmem [#allocation11], %s4399_s30 }
  0x80   : > { %s4409_s11 = scalar_lea.vmem [#allocation10], %s3316_s10 }
  0x81   : > { %3946 = dma.done.wait (%p4322_p3), %s642_s2, 2064  }
  0x82   : > { %3948 = vsyncadd (%p4322_p3), %s642_s2, 4294965232  ;;  %s2939_s17 = sshll.u32 %s4399_s30, 7 }
  0x83   : > { %s4417_s7 = scalar_lea.vmem [#allocation13], %s2939_s17 }
  0x84   : > { %3950 = dma.done.wait (%p83_p8), [#allocation15], 256  }
  0x85   : > { %3952 = vsyncadd (%p83_p8), [#allocation15], 4294967040  ;;  %s2941_s20 = sshll.u32 %s4399_s30, 3 }
  0x86   : > { %s4424_s29 = scalar_lea.vmem [#allocation16], %s2941_s20 }
  0x87   : > { %3954 = dma.done.wait (%p4322_p3), %s612_s16, 128  }
  0x88   : > { %3956 = vsyncadd (%p4322_p3), %s612_s16, 4294967168  ;;  %s5052_s26 = sld [smem:[#allocation30_spill]] }
  0x8e   : > { %s677_s5 = sand.u32 1, %s5052_s26  }
  0x8f   : > { %s4431_s14 = sshll.u32 %s677_s5, 3 }
  0x90   : > { %s679_s4 = scalar_lea.vmem [#allocation17], %s4431_s14 }
  0x91   : > { %3958 = dma.done.wait (%p4377_p10), %s622_s8, 128  }
  0x92   : > { %3960 = vsyncadd (%p4377_p10), %s622_s8, 4294967168  ;;  %v3289_v0 = vld [vmem:[%s4402_s12 + $0x154] sm:$0xf]  ;;  %v3118_v1 = vld [vmem:[%s4402_s12 + $0x168] sm:$0xf0]  ;;  %s5053_s1 = sld [smem:[#allocation35_spill]] }
  0x93   : > { %v3283_v2 = vld [vmem:[%s4402_s12 + $0x124] sm:$0xf]  ;;  %v3121_v3 = vor.u32 %v3289_v0, %v3118_v1  ;;  %v3094_v4 = vld [vmem:[%s4402_s12 + $0x138] sm:$0xf0]  ;;  %v3277_v6 = vld [vmem:[%s4402_s12 + $0xf4] sm:$0xf] }
  0x94   : > { %v3097_v5 = vor.u32 %v3283_v2, %v3094_v4  ;;  %v3070_v7 = vld [vmem:[%s4402_s12 + $0x108] sm:$0xf0]  ;;  %v3271_v9 = vld [vmem:[%s4402_s12 + $0xc4] sm:$0xf]  ;;  %v3046_v10 = vld [vmem:[%s4402_s12 + $0xd8] sm:$0xf0] }
  0x95   : > { %1115 = vmatpush.bf16.msra.mxu1 %v3121_v3  ;;  %v3073_v8 = vor.u32 %v3277_v6, %v3070_v7  ;;  %v3049_v11 = vor.u32 %v3271_v9, %v3046_v10  ;;  %v3265_v12 = vld [vmem:[%s4402_s12 + $0x94] sm:$0xf]  ;;  %v3022_v13 = vld [vmem:[%s4402_s12 + $0xa8] sm:$0xf0]  ;;  %v3259_v15 = vld [vmem:[%s4402_s12 + $0x64] sm:$0xf] }
  0x96   : > { %v3025_v14 = vor.u32 %v3265_v12, %v3022_v13  ;;  %v2998_v16 = vld [vmem:[%s4402_s12 + $0x78] sm:$0xf0]  ;;  %v3253_v18 = vld [vmem:[%s4402_s12 + $0x34] sm:$0xf]  ;;  %v2974_v19 = vld [vmem:[%s4402_s12 + $0x48] sm:$0xf0] }
  0x97   : > { %v3001_v17 = vor.u32 %v3259_v15, %v2998_v16  ;;  %v2977_v20 = vor.u32 %v3253_v18, %v2974_v19  ;;  %v3247_v21 = vld [vmem:[%s4402_s12 + $0x4] sm:$0xf]  ;;  %v2950_v22 = vld [vmem:[%s4402_s12 + $0x18] sm:$0xf0]  ;;  %v3285_v28 = vld [vmem:[%s4402_s12 + $0x134] sm:$0xf] }
  0x98   : > { %v3291_v23 = vld [vmem:[%s4402_s12 + $0x164] sm:$0xf]  ;;  %v3134_v24 = vld [vmem:[%s4402_s12 + $0x178] sm:$0xf0]  ;;  %v2953_v25 = vor.u32 %v3247_v21, %v2950_v22  ;;  %v3110_v29 = vld [vmem:[%s4402_s12 + $0x148] sm:$0xf0] }
  0x99   : > { %1116 = vmatpush.bf16.msra.mxu1 %v3097_v5  ;;  %v812_v26 = vld [vmem:[%s615_s15] sm:$0xff]  ;;  %v3137_v27 = vor.u32 %v3291_v23, %v3134_v24  ;;  %v3292_v32 = vld [vmem:[%s4402_s12 + $0x164] sm:$0xf0]  ;;  %v3092_v33 = vld [vmem:[%s4402_s12 + $0x120] sm:$0xf]  ;;  %v3113_v34 = vor.u32 %v3285_v28, %v3110_v29  ;;  %p768_p2 = scmp.lt.s32.totalorder %s5053_s1, 1 }
  0x9a   : > { %v4460_v30 = vpack.c.bf16 %v812_v26, %v812_v26  ;;  %v3116_v31 = vld [vmem:[%s4402_s12 + $0x150] sm:$0xf]  ;;  %v3286_v36 = vld [vmem:[%s4402_s12 + $0x134] sm:$0xf0]  ;;  %v3279_v37 = vld [vmem:[%s4402_s12 + $0x104] sm:$0xf] }
  0x9b   : > { %v3117_v35 = vor.u32 %v3292_v32, %v3116_v31  ;;  %v3086_v38 = vld [vmem:[%s4402_s12 + $0x118] sm:$0xf0]  ;;  %v3093_v39 = vor.u32 %v3286_v36, %v3092_v33  ;;  %v3068_v40 = vld [vmem:[%s4402_s12 + $0xf0] sm:$0xf]  ;;  %v3280_v41 = vld [vmem:[%s4402_s12 + $0x104] sm:$0xf0] }
  0x9c   : > { %v3089_v42 = vor.u32 %v3279_v37, %v3086_v38  ;;  %v3273_v43 = vld [vmem:[%s4402_s12 + $0xd4] sm:$0xf]  ;;  %v3062_v44 = vld [vmem:[%s4402_s12 + $0xe8] sm:$0xf0]  ;;  %v3069_v45 = vor.u32 %v3280_v41, %v3068_v40  ;;  %v3044_v46 = vld [vmem:[%s4402_s12 + $0xc0] sm:$0xf] }
  0x9d   : > { %1117 = vmatpush.bf16.msra.mxu1 %v3073_v8  ;;  %1102 = vmatpush.bf16.msra.mxu0 %v3117_v35  ;;  %v3274_v47 = vld [vmem:[%s4402_s12 + $0xd4] sm:$0xf0]  ;;  %v3065_v48 = vor.u32 %v3273_v43, %v3062_v44  ;;  %v3267_v49 = vld [vmem:[%s4402_s12 + $0xa4] sm:$0xf]  ;;  %v3038_v50 = vld [vmem:[%s4402_s12 + $0xb8] sm:$0xf0] }
  0x9e   : > { %v3045_v51 = vor.u32 %v3274_v47, %v3044_v46  ;;  %v3020_v52 = vld [vmem:[%s4402_s12 + $0x90] sm:$0xf]  ;;  %v3268_v53 = vld [vmem:[%s4402_s12 + $0xa4] sm:$0xf0]  ;;  %v3041_v54 = vor.u32 %v3267_v49, %v3038_v50  ;;  %v3261_v55 = vld [vmem:[%s4402_s12 + $0x74] sm:$0xf] }
  0x9f   : > { %v3014_v56 = vld [vmem:[%s4402_s12 + $0x88] sm:$0xf0]  ;;  %v3021_v57 = vor.u32 %v3268_v53, %v3020_v52  ;;  %v2996_v58 = vld [vmem:[%s4402_s12 + $0x60] sm:$0xf]  ;;  %v3262_v59 = vld [vmem:[%s4402_s12 + $0x74] sm:$0xf0] }
  0xa0   : > { %v3017_v60 = vor.u32 %v3261_v55, %v3014_v56  ;;  %v3255_v61 = vld [vmem:[%s4402_s12 + $0x44] sm:$0xf]  ;;  %v2990_v62 = vld [vmem:[%s4402_s12 + $0x58] sm:$0xf0]  ;;  %v2997_v63 = vor.u32 %v3262_v59, %v2996_v58  ;;  %v2972_v0 = vld [vmem:[%s4402_s12 + $0x30] sm:$0xf] }
  0xa1   : > { %1118 = vmatpush.bf16.msra.mxu1 %v3049_v11  ;;  %1103 = vmatpush.bf16.msra.mxu0 %v3093_v39  ;;  %v3256_v1 = vld [vmem:[%s4402_s12 + $0x44] sm:$0xf0]  ;;  %v2993_v2 = vor.u32 %v3255_v61, %v2990_v62  ;;  %v3249_v3 = vld [vmem:[%s4402_s12 + $0x14] sm:$0xf]  ;;  %v2966_v4 = vld [vmem:[%s4402_s12 + $0x28] sm:$0xf0] }
  0xa2   : > { %v2973_v5 = vor.u32 %v3256_v1, %v2972_v0  ;;  %v2948_v6 = vld [vmem:[%s4402_s12] sm:$0xf]  ;;  %v3250_v7 = vld [vmem:[%s4402_s12 + $0x14] sm:$0xf0]  ;;  %v2969_v8 = vor.u32 %v3249_v3, %v2966_v4  ;;  %s4495_s24 = scalar_select %p768_p2, %s5053_s1, 1  ;;  %vm1558_vm0 = vcmask 64512  }
  0xa3   : > { %v3132_v9 = vld [vmem:[%s4402_s12 + $0x160] sm:$0xf]  ;;  %v3294_v10 = vld [vmem:[%s4402_s12 + $0x174] sm:$0xf0]  ;;  %v2949_v11 = vor.u32 %v3250_v7, %v2948_v6  ;;  %s5054_s23 = sld [smem:[#allocation49_spill]]  ;;  %vm1240_vm1 = vcmask 1046528  }
  0xa4   : > { %v3133_v12 = vor.u32 %v3294_v10, %v3132_v9  ;;  %v3124_v13 = vld [vmem:[%s4402_s12 + $0x158] sm:$0xf]  ;;  %v3108_v15 = vld [vmem:[%s4402_s12 + $0x130] sm:$0xf]  ;;  %v3288_v16 = vld [vmem:[%s4402_s12 + $0x144] sm:$0xf0] }
  0xa5   : > { %1119 = vmatpush.bf16.msra.mxu1 %v3025_v14  ;;  %1104 = vmatpush.bf16.msra.mxu0 %v3069_v45  ;;  %v3293_v14 = vld [vmem:[%s4402_s12 + $0x16c] sm:$0xf0]  ;;  %v3100_v18 = vld [vmem:[%s4402_s12 + $0x128] sm:$0xf]  ;;  %v3287_v19 = vld [vmem:[%s4402_s12 + $0x13c] sm:$0xf0] }
  0xa6   : > { %v3101_v21 = vor.u32 %v3287_v19, %v3100_v18  ;;  %v3076_v22 = vld [vmem:[%s4402_s12 + $0xf8] sm:$0xf]  ;;  %v3281_v23 = vld [vmem:[%s4402_s12 + $0x10c] sm:$0xf0]  ;;  %v3084_v24 = vld [vmem:[%s4402_s12 + $0x100] sm:$0xf] }
  0xa7   : > { %v3077_v26 = vor.u32 %v3281_v23, %v3076_v22  ;;  %v3060_v28 = vld [vmem:[%s4402_s12 + $0xd0] sm:$0xf]  ;;  %v3276_v29 = vld [vmem:[%s4402_s12 + $0xe4] sm:$0xf0]  ;;  %v3036_v32 = vld [vmem:[%s4402_s12 + $0xa0] sm:$0xf] }
  0xa8   : > { %v3061_v31 = vor.u32 %v3276_v29, %v3060_v28  ;;  %v3270_v33 = vld [vmem:[%s4402_s12 + $0xb4] sm:$0xf0]  ;;  %v3012_v35 = vld [vmem:[%s4402_s12 + $0x70] sm:$0xf]  ;;  %v3264_v36 = vld [vmem:[%s4402_s12 + $0x84] sm:$0xf0] }
  0xa9   : > { %1120 = vmatpush.bf16.msra.mxu1 %v3001_v17  ;;  %1105 = vmatpush.bf16.msra.mxu0 %v3045_v51  ;;  %s774_s22 = scalar_lea.vmem %s5054_s23, %s4495_s24  ;;  %v3125_v17 = vor.u32 %v3293_v14, %v3124_v13  ;;  %v3013_v37 = vor.u32 %v3264_v36, %v3012_v35  ;;  %v2988_v38 = vld [vmem:[%s4402_s12 + $0x40] sm:$0xf]  ;;  %v3258_v39 = vld [vmem:[%s4402_s12 + $0x54] sm:$0xf0]  ;;  %v2964_v41 = vld [vmem:[%s4402_s12 + $0x10] sm:$0xf] }
  0xaa   : > { %v2989_v40 = vor.u32 %v3258_v39, %v2988_v38  ;;  %v3052_v44 = vld [vmem:[%s4402_s12 + $0xc8] sm:$0xf]  ;;  %v3275_v45 = vld [vmem:[%s4402_s12 + $0xdc] sm:$0xf0]  ;;  %v3028_v47 = vld [vmem:[%s4402_s12 + $0x98] sm:$0xf] }
  0xab   : > { %1128 = vmatpush.bf16.msra.mxu2 %v3125_v17  ;;  %v3053_v46 = vor.u32 %v3275_v45, %v3052_v44  ;;  %v3004_v50 = vld [vmem:[%s4402_s12 + $0x68] sm:$0xf]  ;;  %v3263_v51 = vld [vmem:[%s4402_s12 + $0x7c] sm:$0xf0]  ;;  %v2980_v53 = vld [vmem:[%s4402_s12 + $0x38] sm:$0xf] }
  0xac   : > { %v3005_v52 = vor.u32 %v3263_v51, %v3004_v50  ;;  %v2956_v56 = vld [vmem:[%s4402_s12 + $0x8] sm:$0xf]  ;;  %v3536_v61 = vld [vmem:[%s774_s22] ss:$0 sm:$0xff]  ;;  %v3290_v6 = vld [vmem:[%s4402_s12 + $0x15c] sm:$0xf] }
  0xad   : > { %1121 = vmatpush.bf16.msra.mxu1 %v2977_v20  ;;  %1106 = vmatpush.bf16.msra.mxu0 %v3021_v57  ;;  %v3109_v20 = vor.u32 %v3288_v16, %v3108_v15  ;;  %v3251_v57 = vld [vmem:[%s4402_s12 + $0x1c] sm:$0xf0]  ;;  %v3126_v7 = vld [vmem:[%s4402_s12 + $0x170] sm:$0xf0]  ;;  %v3284_v9 = vld [vmem:[%s4402_s12 + $0x12c] sm:$0xf] }
  0xae   : > { %v2957_v58 = vor.u32 %v3251_v57, %v2956_v56  ;;  %v3102_v10 = vld [vmem:[%s4402_s12 + $0x140] sm:$0xf0]  ;;  %v3278_v13 = vld [vmem:[%s4402_s12 + $0xfc] sm:$0xf]  ;;  %v3078_v14 = vld [vmem:[%s4402_s12 + $0x110] sm:$0xf0] }
  0xaf   : > { %1129 = vmatpush.bf16.msra.mxu2 %v3101_v21  ;;  %v3081_v17 = vor.u32 %v3278_v13, %v3078_v14  ;;  %v3272_v18 = vld [vmem:[%s4402_s12 + $0xcc] sm:$0xf]  ;;  %v3054_v19 = vld [vmem:[%s4402_s12 + $0xe0] sm:$0xf0]  ;;  %v3266_v21 = vld [vmem:[%s4402_s12 + $0x9c] sm:$0xf] }
  0xb0   : > { %v3030_v22 = vld [vmem:[%s4402_s12 + $0xb0] sm:$0xf0]  ;;  %v3260_v29 = vld [vmem:[%s4402_s12 + $0x6c] sm:$0xf]  ;;  %s3317_s30 = smul.u32 3, %s4495_s24  ;;  %s5056_s2 = sld [smem:[#allocation48_spill]] }
  0xb1   : > { %1122 = vmatpush.bf16.msra.mxu1 %v2953_v25  ;;  %1107 = vmatpush.bf16.msra.mxu0 %v2997_v63  ;;  %v3282_v25 = vld [vmem:[%s4402_s12 + $0x114] sm:$0xf0]  ;;  %v2982_v38 = vld [vmem:[%s4402_s12 + $0x50] sm:$0xf0]  ;;  %vm1305_vm2 = vcmask 1045504   ;;  %vm1262_vm3 = vcmask 1040384  }
  0xb2   : > { %v4542_v63 = vld [vmem:[#allocation14] sm:$0xff]  ;;  %vm1327_vm4 = vcmask 1041408   ;;  %p788_p8 = scmp.eq.s32.totalorder %s5053_s1, 1  ;;  %s4038_s17 = smov 64   ;;  %vm1851_vm14 = vcmask 523264  }
  0xb3   : > { %1130 = vmatpush.bf16.msra.mxu2 %v3077_v26  ;;  %v3537_v26 = vld [vmem:[%s644_s21] ss:$0 sm:$0xff]  ;;  %s5061_s26 = sld [smem:[#allocation51_spill]]  ;;  %s4046_s14 = smov 32  }
  0xb4   : > { %1123 = vmatmul.bf16.vlgmr.msra.gmra.mxu1 %v4460_v30  ;;  %s5062_s23 = sld [smem:[#allocation52_spill]] }
  0xb5   : > { %1167 = vmatpush.bf16.msrb.mxu1 %v3137_v27  ;;  %1108 = vmatpush.bf16.msra.mxu0 %v2973_v5  ;;  %v3085_v27 = vor.u32 %v3282_v25, %v3084_v24  ;;  %s5064_s22 = sld [smem:[#allocation27_spill]] }
  0xb6   : > { %s771_s21 = scalar_lea.vmem %s5056_s2, %s3317_s30 }
  0xb7   : > { %1131 = vmatpush.bf16.msra.mxu2 %v3053_v46 }
  0xb9   : > { %1168 = vmatpush.bf16.msrb.mxu1 %v3113_v34  ;;  %1109 = vmatpush.bf16.msra.mxu0 %v2949_v11  ;;  %v3037_v34 = vor.u32 %v3270_v33, %v3036_v32  ;;  %v3105_v11 = vor.u32 %v3284_v9, %v3102_v10  ;;  %v4565_v33 = vld [vmem:[%s4424_s29] sm:$0xff] }
  0xbb   : > { %s762_s25 = sand.u32 1, %s5064_s22  }
  0xbc   : > { %1110 = vmatmul.bf16.vlgmr.msra.gmra.mxu0 %v4460_v30  ;;  %s2943_s27 = sshll.u32 %s762_s25, 3 }
  0xbd   : > { %1169 = vmatpush.bf16.msrb.mxu1 %v3089_v42  ;;  %1154 = vmatpush.bf16.msrb.mxu0 %v3133_v12  ;;  %v3252_v42 = vld [vmem:[%s4402_s12 + $0x24] sm:$0xf0] }
  0xbe   : > { %v2965_v43 = vor.u32 %v3252_v42, %v2964_v41  ;;  %v3248_v41 = vld [vmem:[%s4402_s12 + $0xc] sm:$0xf]  ;;  %v2958_v42 = vld [vmem:[%s4402_s12 + $0x20] sm:$0xf0] }
  0xbf   : > { %v2961_v46 = vor.u32 %v3248_v41, %v2958_v42 }
  0xc1   : > { %1170 = vmatpush.bf16.msrb.mxu1 %v3065_v48  ;;  %1155 = vmatpush.bf16.msrb.mxu0 %v3109_v20  ;;  %v3269_v48 = vld [vmem:[%s4402_s12 + $0xac] sm:$0xf0]  ;;  %v3057_v20 = vor.u32 %v3272_v18, %v3054_v19 }
  0xc2   : > { %v3029_v49 = vor.u32 %v3269_v48, %v3028_v47 }
  0xc4   : > { %1132 = vmatpush.bf16.msra.mxu2 %v3029_v49  ;;  %v4583_v49 = vld [vmem:[%s771_s21] sm:$0x7] }
  0xc5   : > { %1171 = vmatpush.bf16.msrb.mxu1 %v3041_v54  ;;  %1156 = vmatpush.bf16.msrb.mxu0 %v3085_v27  ;;  %v3257_v54 = vld [vmem:[%s4402_s12 + $0x4c] sm:$0xf0]  ;;  %v3033_v27 = vor.u32 %v3266_v21, %v3030_v22 }
  0xc6   : > { %v2981_v55 = vor.u32 %v3257_v54, %v2980_v53 }
  0xc8   : > { %1133 = vmatpush.bf16.msra.mxu2 %v3005_v52 }
  0xc9   : > { %1172 = vmatpush.bf16.msrb.mxu1 %v3017_v60  ;;  %1157 = vmatpush.bf16.msrb.mxu0 %v3061_v31  ;;  %v3006_v31 = vld [vmem:[%s4402_s12 + $0x80] sm:$0xf0] }
  0xca   : > { %v3009_v35 = vor.u32 %v3260_v29, %v3006_v31 }
  0xcc   : > { %1134 = vmatpush.bf16.msra.mxu2 %v2981_v55  ;;  %v1209_v55 = vperm.slane %v4583_v49, 2 }
  0xcd   : > { %1173 = vmatpush.bf16.msrb.mxu1 %v2993_v2  ;;  %1158 = vmatpush.bf16.msrb.mxu0 %v3037_v34  ;;  %v1187_v34 = vld [vmem:[%s4409_s11 + $0x8] sm:$0xf] }
  0xce   : > { %v1221_v39 = vperm.slane %v1187_v34, 1  ;;  %v1286_v45 = vperm.slane %v1187_v34, 2  ;;  %v1351_v56 = vperm.slane %v1187_v34, 3 }
  0xd0   : > { %1135 = vmatpush.bf16.msra.mxu2 %v2957_v58  ;;  %v1227_v44 = vperm.slane %v1221_v39, 1  ;;  %v1292_v52 = vperm.slane %v1286_v45, 2 }
  0xd1   : > { %1174 = vmatpush.bf16.msrb.mxu1 %v2969_v8  ;;  %1159 = vmatpush.bf16.msrb.mxu0 %v3013_v37  ;;  %v3129_v8 = vor.u32 %v3290_v6, %v3126_v7  ;;  %v3254_v37 = vld [vmem:[%s4402_s12 + $0x3c] sm:$0xf]  ;;  %s1388_s12 = scalar_select %p788_p8, 1, 0 }
  0xd2   : > { %v1230_v50 = vmul.f32 0.0, %v1227_v44 }
  0xd3   : > { %1136 = vmatmul.bf16.vlgmr.msra.gmra.mxu2 %v4460_v30  ;;  %1141 = vmatpush.bf16.msra.mxu3 %v3129_v8  ;;  %v1389_v29 = vstv %s1388_s12  ;;  %s5065_s12 = sld [smem:[#allocation57_spill]] }
  0xd4   : > { %1175 = vmatmul.bf16.vlgmr.msrb.gmra.mxu1 %v4460_v30  ;;  %v1247_v57 = vrot.slane %v1230_v50, 1  ;;  %v1270_v6 = vrot.slane %v1230_v50, 7  ;;  %vm4592_vm5 = vcmp.eq.s32.totalorder %v1389_v29, 1 }
  0xd5   : > { %1160 = vmatpush.bf16.msrb.mxu0 %v2989_v40  ;;  %v2985_v40 = vor.u32 %v3254_v37, %v2982_v38 }
  0xd7   : > { %1142 = vmatpush.bf16.msra.mxu3 %v3105_v11 }
  0xd9   : > { %1161 = vmatpush.bf16.msrb.mxu0 %v2965_v43  ;;  %v1193_v43 = vperm.slane %v1187_v34, 0  ;;  %s3861_s6 = scalar_lea.hbm %s5065_s12, 32 }
  0xdb   : > { %1143 = vmatpush.bf16.msra.mxu3 %v3081_v17  ;;  %v1199_v48 = vperm.slane %v1193_v43, 0 }
  0xdc   : > { %1162 = vmatmul.bf16.vlgmr.msrb.gmra.mxu0 %v4460_v30 }
  0xdd   : > { %1815 = vmatpush.msra.mxu0 %v4542_v63  ;;  %v1202_v53 = vmul.f32 0.0, %v1199_v48 }
  0xdf   : > { %1144 = vmatpush.bf16.msra.mxu3 %v3057_v20 }
  0xe3   : > { %1145 = vmatpush.bf16.msra.mxu3 %v3033_v27 }
  0xe7   : > { %1146 = vmatpush.bf16.msra.mxu3 %v3009_v35 }
  0xeb   : > { %1147 = vmatpush.bf16.msra.mxu3 %v2985_v40 }
  0xef   : > { %1148 = vmatpush.bf16.msra.mxu3 %v2961_v46 }
  0xf2   : > { %1149 = vmatmul.bf16.vlgmr.msra.gmra.mxu3 %v4460_v30 }
 0x131   : > { %v4535_v59 = vpop.f32.mrf.mxu1 }
 0x139   : > { %v1126_v60 = vpop.f32.mrf.mxu1  ;;  %v4545_v5 = vpop.f32.mrf.mxu0 }
 0x13a   : > { %v1295_v60 = vmul.f32 0.0, %v1292_v52 }
 0x141   : > { %v1113_v16 = vpop.f32.mrf.mxu0 }
 0x151   : > { %v1176_v62 = vpop.f32.mrf.mxu1 }
 0x152   : > { %v1542_v0 = vadd.f32 %v3536_v61, %v1176_v62  ;;  %v1215_v62 = vadd.f32 %v1209_v55, %v1202_v53 }
 0x154   : > { %v1544_v1 = vand.u32 2147483647, %v1542_v0  ;;  %v1543_v24 = vmax.f32 %v1542_v0, 0.0  ;;  %v1357_v0 = vperm.slane %v1351_v56, 3 }
 0x156   : > { %v1545_v2 = vsub.f32 0.0, %v1544_v1  ;;  %v4601_v42 = vpop.f32.mrf.mxu2 }
 0x158   : > { %v1546_v3 = vmul.f32 1.442695, %v1545_v2  ;;  %v1312_v2 = vrot.slane %v1295_v60, 2 }
 0x159   : > { %v1178_v4 = vpop.f32.mrf.mxu1  ;;  %v1163_v36 = vpop.f32.mrf.mxu0 }
 0x15a   : > { %3538 = vpow2.f32 %v1546_v3  ;;  %v1233_v51 = vmul.f32 %v1227_v44, %v1163_v36  ;;  %v1205_v54 = vmul.f32 %v1199_v48, %v1163_v36  ;;  %v1298_v61 = vmul.f32 %v1292_v52, %v1163_v36 }
 0x15b   : > { %v1360_v30 = vmul.f32 %v1357_v0, %v1163_v36 }
 0x15c   : > { %v1248_v58 = vrot.slane %v1233_v51, 1  ;;  %v1313_v3 = vrot.slane %v1298_v61, 2  ;;  %v1265_v4 = vrot.slane %v1233_v51, 7  ;;  %v1330_v11 = vrot.slane %v1298_v61, 6 }
 0x15e   : > { %v1249_v1 = vsel %vm1240_vm1, %v1247_v57, %v1248_v58  ;;  %v1314_v9 = vsel %vm1305_vm2, %v1312_v2, %v1313_v3  ;;  %v1271_v10 = vsel %vm1262_vm3, %v1265_v4, %v1270_v6 }
 0x15f   : > { %v1258_v7 = vadd.f32 %v1249_v1, %v1215_v62  ;;  %v1283_v17 = vadd.f32 %v1271_v10, %v1215_v62  ;;  %v1582_v10 = vld [vmem:[%s679_s4] sm:$0xff]  ;;  %s4047_s4 = smov 96  }
 0x160   : > { %v3539_v12 = vpop.eup %3538  ;;  %1633 = vmatpush.msrb.mxu3 %v1582_v10 }
 0x161   : > { %v1548_v15 = vadd.f32 1.0, %v3539_v12  ;;  %v1165_v47 = vpop.f32.mrf.mxu0  ;;  %v1335_v12 = vrot.slane %v1295_v60, 6  ;;  %v1323_v13 = vadd.f32 %v1314_v9, %v1258_v7 }
 0x162   : > { %v1139_v47 = vpop.f32.mrf.mxu2 }
 0x163   : > { %3540 = vlog2.f32 %v1548_v15  ;;  %v1366_v15 = vrot.slane %v1360_v30, 3  ;;  %v1336_v18 = vsel %vm1327_vm4, %v1330_v11, %v1335_v12  ;;  %v4610_v12 = vld [vmem:[%s4409_s11] sm:$0xff]  ;;  %s2944_s11 = sshll.u32 %s4495_s24, 1  ;;  %s5063_s24 = sld [smem:[#allocation34_spill]] }
 0x164   : > { %v1348_v22 = vadd.f32 %v1336_v18, %v1283_v17  ;;  %v4618_v17 = vld [vmem:[#allocation14 + $0x8] sm:$0xff]  ;;  %s778_s5 = scalar_lea.vmem %s5061_s26, %s2944_s11 }
 0x165   : > { %v1372_v19 = vadd.f32 %v1366_v15, %v1323_v13  ;;  %1682 = vmatpush.msra.mxu3 %v4618_v17  ;;  %1835 = vmatpush.msrb.mxu0 %v4618_v17 }
 0x169   : > { %v3541_v23 = vpop.eup %3540  ;;  %s3242_s16 = sshll.u32 %s5063_s24, 1 }
 0x16a   : > { %v1550_v25 = vmul.f32 0.6931472, %v3541_v23  ;;  %v1378_v23 = vrot.slane %v1360_v30, 5  ;;  %s2643_s30 = sadd.s32 %s5053_s1, %s3242_s16  ;;  %s2628_s1 = scalar_lea.sflag [#allocation7], %s762_s25 }
 0x16b   : > { %s3243_s10 = sshll.u32 %s2643_s30, 3 }
 0x16c   : > { %v4559_v28 = vadd.f32 %v1550_v25, %v1543_v24  ;;  %v1403_v24 = vrot.slane %v1372_v19, 2  ;;  %v1387_v27 = vadd.f32 %v1378_v23, %v1348_v22  ;;  %v1191_v19 = vperm.slane %v4610_v12, 0 }
 0x16d   : > { %v1284_v22 = vperm.slane %v4610_v12, 2 }
 0x16e   : > { %v1556_v32 = vmul.f32 %v3537_v26, %v4559_v28 }
 0x170   : > { %1583 = vxpose.xlu0.b32.start.end [1/1] (short) (narrow) %v1556_v32, 8  ;;  %1577 = vmatpush.msrb.mxu2 %v1556_v32 }
 0x171   : > { %3144 = vmatmul.msk.f32.vlgmr.msrb.gmra.mxu2 %vm1558_vm0, %v4565_v33 }
 0x172   : > { %1662 = vmatpush.msra.mxu2 %v4542_v63 }
 0x174   : > { %1723 = vmatpush.msrb.mxu2 %v4542_v63 }
 0x179   : > { %3146 = vmatmul.msk.f32.vlgmr.msra.gmra.mxu2 %vm1558_vm0, %v4559_v28 }
 0x17a   : > { %1770 = vmatpush.msra.mxu2 %v4542_v63  ;;  %v1218_v63 = vadd.f32 %v1209_v55, %v1205_v54 }
 0x17c   : > { %v1261_v8 = vadd.f32 %v1248_v58, %v1218_v63  ;;  %v1280_v16 = vadd.f32 %v1265_v4, %v1218_v63 }
 0x17e   : > { %v1326_v14 = vadd.f32 %v1313_v3, %v1261_v8  ;;  %v1345_v21 = vadd.f32 %v1330_v11, %v1280_v16  ;;  %v4039_v11 = vmov 3  }
 0x17f   : > { %3527 = vset.pattern.permute.xlu1 %v4039_v11 }
 0x180   : > { %v1375_v20 = vadd.f32 %v1366_v15, %v1326_v14  ;;  %v1384_v26 = vadd.f32 %v1378_v23, %v1345_v21  ;;  %v1219_v14 = vperm.slane %v4610_v12, 1 }
 0x182   : > { %v1404_v25 = vrot.slane %v1375_v20, 2  ;;  %v1225_v21 = vperm.slane %v1219_v14, 1 }
 0x184   : > { %v1405_v32 = vsel %vm1305_vm2, %v1403_v24, %v1404_v25  ;;  %v1417_v35 = vsel %vm4592_vm5, %v1387_v27, %v1404_v25  ;;  %v1197_v24 = vperm.slane %v1191_v19, 0  ;;  %v1228_v27 = vmul.f32 0.0, %v1225_v21 }
 0x185   : > { %v1414_v34 = vsel %vm4592_vm5, %v1384_v26, %v1405_v32  ;;  %v3143_v37 = vmul.f32 -1.442695, %v1417_v35  ;;  %v1231_v29 = vmul.f32 %v1225_v21, %v4601_v42  ;;  %v1290_v32 = vperm.slane %v1284_v22, 2 }
 0x186   : > { %v3140_v36 = vmul.f32 -1.442695, %v1414_v34  ;;  %v4044_v22 = vmov 5  }
 0x188   : > { %3542 = vpow2.f32 %v3140_v36  ;;  %v1200_v36 = vmul.f32 0.0, %v1197_v24 }
 0x189   : > { %3544 = vpow2.f32 %v3143_v37  ;;  %v1203_v37 = vmul.f32 %v1197_v24, %v4601_v42 }
 0x18e   : > { %v3543_v38 = vpop.eup %3542 }
 0x18f   : > { %v3545_v39 = vpop.eup %3544  ;;  %v1438_v40 = vadd.f32 1.0, %v3543_v38  ;;  %v1207_v38 = vperm.slane %v4583_v49, 0 }
 0x190   : > { %v1441_v41 = vadd.f32 1.0, %v3545_v39  ;;  %v1349_v39 = vperm.slane %v4610_v12, 3 }
 0x191   : > { %3546 = vrcp.f32 %v1438_v40  ;;  %vm1477_vm6 = vweird.f32 %v1438_v40  ;;  %v1483_v53 = vand.u32 2147483648, %v1438_v40  ;;  %v1481_v56 = vand.u32 2147483647, %v1438_v40 }
 0x192   : > { %3548 = vrcp.f32 %v1441_v41  ;;  %vm1522_vm8 = vweird.f32 %v1441_v41  ;;  %v1528_v54 = vand.u32 2147483648, %v1441_v41  ;;  %v1526_v58 = vand.u32 2147483647, %v1441_v41 }
 0x193   : > { %v1484_v60 = vor.u32 1.1754944e-38, %v1483_v53  ;;  %vm1482_vm12 = vcmp.eq.f32.partialorder %v1481_v56, 8.507059e+37  ;;  %v1216_v47 = vadd.f32 %v1207_v38, %v1203_v37  ;;  %v1263_v56 = vrot.slane %v1231_v29, 7 }
 0x194   : > { %v1529_v61 = vor.u32 1.1754944e-38, %v1528_v54  ;;  %vm1527_vm13 = vcmp.eq.f32.partialorder %v1526_v58, 8.507059e+37 }
 0x197   : > { %v3547_v43 = vpop.eup %3546 }
 0x198   : > { %v3549_v44 = vpop.eup %3548  ;;  %v1473_v45 = vmul.f32 %v3547_v43, %v1438_v40  ;;  %vm1478_vm7 = vweird.f32 %v3547_v43  ;;  %v1241_v40 = vrot.slane %v1228_v27, 1 }
 0x199   : > { %v1518_v46 = vmul.f32 %v3549_v44, %v1441_v41  ;;  %vm1523_vm9 = vweird.f32 %v3549_v44  ;;  %vm1479_vm10 = vmor %vm1477_vm6, %vm1478_vm7  ;;  %v1242_v41 = vrot.slane %v1231_v29, 1 }
 0x19a   : > { %v1474_v48 = vsub.f32 1.0, %v1473_v45  ;;  %vm1524_vm11 = vmor %vm1522_vm8, %vm1523_vm9  ;;  %vm1691_vm8 = vcmask 1044480  }
 0x19b   : > { %v1519_v50 = vsub.f32 1.0, %v1518_v46  ;;  %v1213_v46 = vadd.f32 %v1207_v38, %v1200_v36  ;;  %v1259_v54 = vadd.f32 %v1242_v41, %v1216_v47 }
 0x19c   : > { %v1475_v51 = vmul.f32 %v3547_v43, %v1474_v48  ;;  %v1355_v48 = vperm.slane %v1349_v39, 3 }
 0x19d   : > { %v1520_v52 = vmul.f32 %v3549_v44, %v1519_v50  ;;  %v1243_v50 = vsel %vm1240_vm1, %v1241_v40, %v1242_v41 }
 0x19e   : > { %v1476_v55 = vadd.f32 %v3547_v43, %v1475_v51  ;;  %v1256_v53 = vadd.f32 %v1243_v50, %v1213_v46 }
 0x19f   : > { %v1521_v57 = vadd.f32 %v3549_v44, %v1520_v52 }
 0x1a0   : > { %v1480_v62 = vsel %vm1479_vm10, %v3547_v43, %v1476_v55  ;;  %v1293_v43 = vmul.f32 0.0, %v1290_v32  ;;  %v1358_v55 = vmul.f32 %v1355_v48, %v4601_v42 }
 0x1a1   : > { %v1525_v63 = vsel %vm1524_vm11, %v3549_v44, %v1521_v57  ;;  %v1485_v0 = vsel %vm1482_vm12, %v1484_v60, %v1480_v62  ;;  %v1296_v44 = vmul.f32 %v1290_v32, %v4601_v42  ;;  %v1266_v57 = vrot.slane %v1228_v27, 7 }
 0x1a2   : > { %v1530_v1 = vsel %vm1527_vm13, %v1529_v61, %v1525_v63  ;;  %v1534_v2 = vmul.f32 %v1485_v0, %v1414_v34  ;;  %v4040_v34 = vmov 1   ;;  %v1306_v51 = vrot.slane %v1293_v43, 2 }
 0x1a3   : > { %v1537_v3 = vmul.f32 %v1530_v1, %v1417_v35  ;;  %v4041_v35 = vmov 7   ;;  %v1307_v52 = vrot.slane %v1296_v44, 2  ;;  %v1364_v62 = vrot.slane %v1358_v55, 3 }
 0x1a4   : > { %v1267_v63 = vsel %vm1262_vm3, %v1263_v56, %v1266_v57  ;;  %v1328_v0 = vrot.slane %v1296_v44, 6  ;;  %v1331_v1 = vrot.slane %v1293_v43, 6  ;;  %v1376_v11 = vrot.slane %v1358_v55, 5 }
 0x1a5   : > { %v1840_v4 = vpack.c.bf16 %v1537_v3, %v1534_v2  ;;  %v1308_v58 = vsel %vm1305_vm2, %v1306_v51, %v1307_v52  ;;  %v1324_v61 = vadd.f32 %v1307_v52, %v1259_v54  ;;  %v4650_v2 = vpop.f32.mrf.mxu3  ;;  %v4042_v3 = vmov 2  }
 0x1a6   : > { %v1321_v60 = vadd.f32 %v1308_v58, %v1256_v53  ;;  %3529 = vset.pattern.permute.xlu2 %v4042_v3  ;;  %v1281_v42 = vadd.f32 %v1267_v63, %v1213_v46  ;;  %v1192_v32 = vperm.slane %v4610_v12, 4  ;;  %v1208_v46 = vperm.slane %v4583_v49, 1 }
 0x1a7   : > { %v1842_v6 = vshrl.u32 %v1840_v4, 16  ;;  %v1845_v7 = vshll.u32 %v1840_v4, 16  ;;  %v1278_v4 = vadd.f32 %v1263_v56, %v1216_v47 }
 0x1a8   : > { %v1198_v38 = vperm.slane %v1192_v32, 0 }
 0x1a9   : > { %v1844_v8 = vrot.slane %v1842_v6, 1  ;;  %v1847_v30 = vrot.slane %v1845_v7, 2  ;;  %v4043_v6 = vmov 6   ;;  %v1370_v7 = vadd.f32 %v1364_v62, %v1321_v60 }
 0x1aa   : > { %v1343_v10 = vadd.f32 %v1328_v0, %v1278_v4  ;;  %v1201_v43 = vmul.f32 0.0, %v1198_v38  ;;  %v1204_v44 = vmul.f32 %v1198_v38, %v4650_v2 }
 0x1ab   : > { %v4603_v9 = vor.u32 %v1847_v30, %v1844_v8  ;;  %v1373_v8 = vadd.f32 %v1364_v62, %v1324_v61  ;;  %v1332_v30 = vsel %vm1327_vm4, %v1328_v0, %v1331_v1 }
 0x1ac   : > { %v1346_v14 = vadd.f32 %v1332_v30, %v1281_v42  ;;  %v1382_v21 = vadd.f32 %v1376_v11, %v1343_v10  ;;  %v1214_v53 = vadd.f32 %v1208_v46, %v1201_v43  ;;  %v1217_v54 = vadd.f32 %v1208_v46, %v1204_v44 }
 0x1d7   : > { %3535 = vset.pattern.permute.xlu0 %v4041_v35 }
 0x1de   : > { %1849 = vrot.lane.b32.xlu0 %v4603_v9, %s4038_s17 }
 0x1f4   : > { %v4612_v13 = vpop.f32.mrf.mxu2 }
 0x1f5   : > { %v1639_v15 = vrot.slane %v4612_v13, 7  ;;  %v1703_v16 = vmul.f32 1.442695, %v4612_v13  ;;  %1986 = vperm.xlu1 %3527, %v4612_v13   ;;  %1948 = vperm.xlu2 %3529, %v4612_v13  }
 0x1f7   : > { %v4625_v18 = vsel %vm4592_vm5, %v4612_v13, %v1639_v15  ;;  %3550 = vpow2.f32 %v1703_v16  ;;  %v1397_v15 = vrot.slane %v1370_v7, 2  ;;  %v1398_v16 = vrot.slane %v1373_v8, 2 }
 0x1f8   : > { %v1748_v20 = vperm.slane %v4625_v18, 0 }
 0x1f9   : > { %v1399_v24 = vsel %vm1305_vm2, %v1397_v15, %v1398_v16 }
 0x1fa   : > { %v1749_v23 = vsub.f32 %v1748_v20, %v4612_v13  ;;  %v1152_v20 = vpop.f32.mrf.mxu3  ;;  %v4662_v27 = vsel %vm4592_vm5, %v1382_v21, %v1399_v24 }
 0x1fb   : > { %v3138_v36 = vmul.f32 -1.442695, %v4662_v27 }
 0x1fc   : > { %v1750_v25 = vmul.f32 1.442695, %v1749_v23  ;;  %v1385_v23 = vadd.f32 %v1376_v11, %v1346_v14 }
 0x1fd   : > { %v4631_v26 = vpop.eup %3550  ;;  %3528 = vset.pattern.permute.xlu1 %v4040_v34  ;;  %3531 = vset.pattern.permute.xlu2 %v4044_v22 }
 0x1fe   : > { %3552 = vpow2.f32 %v1750_v25  ;;  %3148 = vmatmul.msk.f32.vlgmr.msrb.gmra.mxu2 %vm1558_vm0, %v4631_v26  ;;  %1907 = vperm.xlu1 %3528, %v4612_v13   ;;  %v1220_v25 = vperm.slane %v4610_v12, 5  ;;  %v4666_v29 = vsel %vm4592_vm5, %v1385_v23, %v1398_v16 }
 0x1ff   : > { %2057 = vperm.xlu2 %3531, %v4612_v13   ;;  %v3141_v37 = vmul.f32 -1.442695, %v4666_v29  ;;  %3554 = vpow2.f32 %v3138_v36 }
 0x200   : > { %v1226_v34 = vperm.slane %v1220_v25, 1 }
 0x201   : > { %3556 = vpow2.f32 %v3141_v37 }
 0x202   : > { %v1229_v39 = vmul.f32 0.0, %v1226_v34  ;;  %v1232_v40 = vmul.f32 %v1226_v34, %v4650_v2 }
 0x204   : > { %v4641_v45 = vpop.eup %3552  ;;  %v1244_v47 = vrot.slane %v1229_v39, 1  ;;  %v1245_v48 = vrot.slane %v1232_v40, 1  ;;  %v1264_v60 = vrot.slane %v1232_v40, 7 }
 0x205   : > { %v3555_v52 = vpop.eup %3554 }
 0x206   : > { %3150 = vmatmul.msk.f32.vlgmr.msra.gmra.mxu2 %vm1558_vm0, %v4641_v45  ;;  %3530 = vset.pattern.permute.xlu1 %v4041_v35  ;;  %v1285_v35 = vperm.slane %v4610_v12, 6  ;;  %v1246_v57 = vsel %vm1240_vm1, %v1244_v47, %v1245_v48  ;;  %v1436_v61 = vadd.f32 1.0, %v3555_v52  ;;  %v1260_v63 = vadd.f32 %v1245_v48, %v1217_v54 }
 0x207   : > { %2131 = vperm.xlu1 %3530, %v4612_v13   ;;  %v3557_v56 = vpop.eup %3556  ;;  %v1279_v30 = vadd.f32 %v1264_v60, %v1217_v54 }
 0x208   : > { %v1291_v41 = vperm.slane %v1285_v35, 2  ;;  %v4685_v62 = vadd.f32 1.0, %v3557_v56  ;;  %3558 = vrcp.f32 %v1436_v61  ;;  %vm1447_vm15 = vweird.f32 %v1436_v61 }
 0x209   : > { %v1453_v43 = vand.u32 2147483648, %v1436_v61  ;;  %v1451_v31 = vand.u32 2147483647, %v1436_v61 }
 0x20a   : > { %v1294_v50 = vmul.f32 0.0, %v1291_v41  ;;  %v1297_v51 = vmul.f32 %v1291_v41, %v4650_v2  ;;  %3560 = vrcp.f32 %v4685_v62  ;;  %v1498_v46 = vand.u32 2147483648, %v4685_v62 }
 0x20b   : > { %v1496_v48 = vand.u32 2147483647, %v4685_v62  ;;  %v1454_v52 = vor.u32 1.1754944e-38, %v1453_v43  ;;  %vm1452_vm6 = vcmp.eq.f32.partialorder %v1451_v31, 8.507059e+37 }
 0x20c   : > { %v1309_v58 = vrot.slane %v1294_v50, 2  ;;  %v1310_v49 = vrot.slane %v1297_v51, 2  ;;  %v1329_v4 = vrot.slane %v1297_v51, 6 }
 0x20d   : > { %vm1497_vm7 = vcmp.eq.f32.partialorder %v1496_v48, 8.507059e+37 }
 0x20e   : > { %v1311_v1 = vsel %vm1305_vm2, %v1309_v58, %v1310_v49  ;;  %v1325_v7 = vadd.f32 %v1310_v49, %v1260_v63  ;;  %v3559_v15 = vpop.eup %3558  ;;  %v2223_v58 = vld [vmem:[%s778_s5] sm:$0x3] }
 0x20f   : > { %3532 = vset.pattern.permute.xlu1 %v4043_v6  ;;  %v1333_v6 = vrot.slane %v1294_v50, 6  ;;  %v1443_v21 = vmul.f32 %v3559_v15, %v1436_v61  ;;  %vm1448_vm1 = vweird.f32 %v3559_v15 }
 0x210   : > { %2094 = vperm.xlu1 %3532, %v4612_v13   ;;  %v3561_v20 = vpop.eup %3560 }
 0x211   : > { %v1334_v11 = vsel %vm1327_vm4, %v1329_v4, %v1333_v6  ;;  %v1488_v24 = vmul.f32 %v3561_v20, %v4685_v62  ;;  %v1444_v34 = vsub.f32 1.0, %v1443_v21  ;;  %vm4709_vm4 = vmor %vm1447_vm15, %vm1448_vm1 }
 0x213   : > { %v1489_v36 = vsub.f32 1.0, %v1488_v24  ;;  %v1445_v41 = vmul.f32 %v3559_v15, %v1444_v34 }
 0x214   : > { %v1599_v19 = vpop.trf.xlu0 }
 0x215   : > { %3145 = vmatmul.msk.f32.vlgmr.msrb.gmra.mxu3 %vm1558_vm0, %v1599_v19  ;;  %v1446_v44 = vadd.f32 %v3559_v15, %v1445_v41 }
 0x216   : > { %1743 = vmatpush.msrb.mxu3 %v4618_v17 }
 0x217   : > { %v1450_v54 = vsel %vm4709_vm4, %v3559_v15, %v1446_v44  ;;  %vm1904_vm4 = vcmask 261120  }
 0x218   : > { %v1455_v49 = vsel %vm1452_vm6, %v1454_v52, %v1450_v54  ;;  %vm2021_vm6 = vcmask 1048320  }
 0x219   : > { %v4722_v61 = vmul.f32 %v1455_v49, %v4662_v27 }
 0x21d   : > { %3147 = vmatmul.msk.f32.vlgmr.msra.gmra.mxu3 %vm1558_vm0, %v4559_v28  ;;  %v1856_v28 = vsel %vm1851_vm14, %v4603_v9, 0 }
 0x21e   : > { %1790 = vmatpush.msra.mxu3 %v4618_v17  ;;  %v1350_v17 = vperm.slane %v4610_v12, 7  ;;  %v1268_v12 = vrot.slane %v1229_v39, 7 }
 0x220   : > { %v1356_v55 = vperm.slane %v1350_v17, 3  ;;  %v1269_v3 = vsel %vm1262_vm3, %v1264_v60, %v1268_v12  ;;  %vm1493_vm3 = vweird.f32 %v3561_v20  ;;  %v2225_v12 = vperm.slane %v2223_v58, 0 }
 0x221   : > { %v1282_v10 = vadd.f32 %v1269_v3, %v1214_v53  ;;  %v3155_v17 = vadd.f32 -1.0, %v4565_v33 }
 0x222   : > { %v1359_v0 = vmul.f32 %v1356_v55, %v4650_v2  ;;  %v1499_v55 = vor.u32 1.1754944e-38, %v1498_v46 }
 0x223   : > { %v1347_v16 = vadd.f32 %v1334_v11, %v1282_v10 }
 0x224   : > { %v1365_v8 = vrot.slane %v1359_v0, 3  ;;  %v1377_v19 = vrot.slane %v1359_v0, 5 }
 0x225   : > { %3149 = vmatmul.msk.f32.vlgmr.msrb.gmra.mxu3 %vm1558_vm0, %v4631_v26  ;;  %v1257_v26 = vadd.f32 %v1246_v57, %v1214_v53 }
 0x226   : > { %1865 = vmatpush.bf16.xpose.msrb.mxu3 %v1856_v28  ;;  %v1374_v14 = vadd.f32 %v1365_v8, %v1325_v7  ;;  %v1386_v32 = vadd.f32 %v1377_v19, %v1347_v16  ;;  %v1490_v28 = vmul.f32 %v3561_v20, %v1489_v36 }
 0x227   : > { %v1322_v42 = vadd.f32 %v1311_v1, %v1257_v26  ;;  %v1795_v26 = vmul.f32 1.442695, %v4625_v18  ;;  %v2229_v1 = vmul.f32 %v2225_v12, %v4722_v61 }
 0x228   : > { %v1401_v23 = vrot.slane %v1374_v14, 2  ;;  %v1491_v47 = vadd.f32 %v3561_v20, %v1490_v28 }
 0x229   : > { %v1371_v2 = vadd.f32 %v1365_v8, %v1322_v42  ;;  %v2237_v18 = vrot.slane %v2229_v1, 3 }
 0x22a   : > { %v4702_v38 = vsel %vm4592_vm5, %v1386_v32, %v1401_v23  ;;  %v2226_v32 = vperm.slane %v2223_v58, 1 }
 0x22b   : > { %v1400_v22 = vrot.slane %v1371_v2, 2  ;;  %v3142_v40 = vmul.f32 -1.442695, %v4702_v38 }
 0x22d   : > { %3151 = vmatmul.msk.f32.vlgmr.msra.gmra.mxu3 %vm1558_vm0, %v4641_v45  ;;  %v1344_v45 = vadd.f32 %v1329_v4, %v1279_v30  ;;  %v1402_v35 = vsel %vm1305_vm2, %v1400_v22, %v1401_v23  ;;  %vm1492_vm2 = vweird.f32 %v4685_v62 }
 0x22f   : > { %v1383_v25 = vadd.f32 %v1377_v19, %v1344_v45 }
 0x231   : > { %v4698_v37 = vsel %vm4592_vm5, %v1383_v25, %v1402_v35  ;;  %vm1494_vm5 = vmor %vm1492_vm2, %vm1493_vm3  ;;  %vm1887_vm3 = vcmask 1043456  }
 0x232   : > { %v3139_v39 = vmul.f32 -1.442695, %v4698_v37  ;;  %v1495_v57 = vsel %vm1494_vm5, %v3561_v20, %v1491_v47  ;;  %v4745_v47 = vmul.f32 1e+30, %v3155_v17  ;;  %vm1983_vm5 = vcmask 785920  }
 0x233   : > { %v1500_v60 = vsel %vm1497_vm7, %v1499_v55, %v1495_v57  ;;  %v1692_v55 = vrot.slane %v4722_v61, 3 }
 0x234   : > { %3562 = vpow2.f32 %v3139_v39  ;;  %v4726_v63 = vmul.f32 %v1500_v60, %v4666_v29 }
 0x235   : > { %3564 = vpow2.f32 %v3142_v40 }
 0x236   : > { %v2231_v6 = vmul.f32 %v2225_v12, %v4726_v63  ;;  %v1693_v33 = vrot.slane %v4726_v63, 3 }
 0x238   : > { %v2238_v29 = vrot.slane %v2231_v6, 3 }
 0x23a   : > { %v3563_v50 = vpop.eup %3562  ;;  %v4735_v24 = vsel %vm1691_vm8, %v2237_v18, %v2238_v29 }
 0x23b   : > { %v3565_v51 = vpop.eup %3564  ;;  %v1437_v53 = vadd.f32 1.0, %v3563_v50 }
 0x23c   : > { %v1440_v56 = vadd.f32 1.0, %v3565_v51 }
 0x23d   : > { %3566 = vrcp.f32 %v1437_v53  ;;  %v1468_v30 = vand.u32 2147483648, %v1437_v53  ;;  %vm1462_vm9 = vweird.f32 %v1437_v53  ;;  %v1466_v14 = vand.u32 2147483647, %v1437_v53 }
 0x23e   : > { %3568 = vrcp.f32 %v1440_v56  ;;  %v1513_v11 = vand.u32 2147483648, %v1440_v56  ;;  %vm1507_vm12 = vweird.f32 %v1440_v56  ;;  %v1511_v19 = vand.u32 2147483647, %v1440_v56 }
 0x23f   : > { %3570 = vpow2.f32 %v1795_v26  ;;  %v1469_v15 = vor.u32 1.1754944e-38, %v1468_v30  ;;  %vm1467_vm15 = vcmp.eq.f32.partialorder %v1466_v14, 8.507059e+37 }
 0x240   : > { %v1514_v20 = vor.u32 1.1754944e-38, %v1513_v11  ;;  %vm1512_vm2 = vcmp.eq.f32.partialorder %v1511_v19, 8.507059e+37 }
 0x243   : > { %v3567_v62 = vpop.eup %3566 }
 0x244   : > { %v3569_v0 = vpop.eup %3568  ;;  %v1458_v4 = vmul.f32 %v3567_v62, %v1437_v53  ;;  %vm1463_vm10 = vweird.f32 %v3567_v62 }
 0x245   : > { %v1503_v42 = vmul.f32 %v3569_v0, %v1440_v56  ;;  %vm1464_vm11 = vmor %vm1462_vm9, %vm1463_vm10  ;;  %vm1508_vm13 = vweird.f32 %v3569_v0  ;;  %v3571_v21 = vpop.eup %3570 }
 0x246   : > { %v1459_v27 = vsub.f32 1.0, %v1458_v4  ;;  %vm1509_vm1 = vmor %vm1507_vm12, %vm1508_vm13  ;;  %3152 = vmatmul.msk.f32.vlgmr.msra.gmra.mxu0 %vm1558_vm0, %v3571_v21 }
 0x247   : > { %v1504_v7 = vsub.f32 1.0, %v1503_v42  ;;  %v1664_v42 = vpop.f32.mrf.mxu2 }
 0x248   : > { %v1460_v8 = vmul.f32 %v3567_v62, %v1459_v27  ;;  %v1694_v27 = vsel %vm1691_vm8, %v1692_v55, %v1693_v33 }
 0x249   : > { %v1505_v10 = vmul.f32 %v3569_v0, %v1504_v7  ;;  %v4769_v30 = vmul.f32 %v1694_v27, %v1664_v42 }
 0x24a   : > { %v1461_v2 = vadd.f32 %v3567_v62, %v1460_v8 }
 0x24b   : > { %v1506_v45 = vadd.f32 %v3569_v0, %v1505_v10 }
 0x24c   : > { %v1465_v16 = vsel %vm1464_vm11, %v3567_v62, %v1461_v2 }
 0x24d   : > { %v1470_v22 = vsel %vm1467_vm15, %v1469_v15, %v1465_v16  ;;  %v1510_v23 = vsel %vm1509_vm1, %v3569_v0, %v1506_v45 }
 0x24e   : > { %v1533_v25 = vmul.f32 %v1470_v22, %v4698_v37  ;;  %v1515_v34 = vsel %vm1512_vm2, %v1514_v20, %v1510_v23  ;;  %3153 = vmatmul.msk.f32.vlgmr.msrb.gmra.mxu0 %vm1558_vm0, %v3571_v21  ;;  %v4045_v37 = vmov 0   ;;  %v4048_v23 = vmov 4  }
 0x24f   : > { %v1536_v35 = vmul.f32 %v1515_v34, %v4702_v38  ;;  %v1949_v31 = vpop.permute.xlu2 %1948  ;;  %3533 = vset.pattern.permute.xlu2 %v4045_v37 }
 0x250   : > { %v4729_v3 = vpop.permute.xlu0 %1849  ;;  %v2230_v36 = vmul.f32 %v2226_v32, %v1533_v25  ;;  %v1695_v0 = vrot.slane %v1533_v25, 3 }
 0x251   : > { %3154 = vmatmul.msk.bf16.vlgmr.msrb.gmra.mxu3 %vm1851_vm14, %v4729_v3  ;;  %v2232_v39 = vmul.f32 %v2226_v32, %v1536_v35  ;;  %v1696_v1 = vrot.slane %v1536_v35, 3 }
 0x252   : > { %v2240_v40 = vrot.slane %v2230_v36, 3 }
 0x253   : > { %v2241_v41 = vrot.slane %v2232_v39, 3  ;;  %v1697_v29 = vsel %vm1691_vm8, %v1695_v0, %v1696_v1 }
 0x255   : > { %v4742_v28 = vsel %vm1691_vm8, %v2240_v40, %v2241_v41 }
 0x259   : > { %v2058_v53 = vpop.permute.xlu2 %2057 }
 0x267   : > { %v1987_v43 = vpop.permute.xlu1 %1986 }
 0x270   : > { %v1908_v44 = vpop.permute.xlu1 %1907 }
 0x279   : > { %v2132_v46 = vpop.permute.xlu1 %2131 }
 0x282   : > { %v2095_v54 = vpop.permute.xlu1 %2094 }
 0x298   : > { %v4747_v38 = vpop.f32.mrf.mxu3 }
 0x299   : > { %v1910_v48 = vperm.slane %v4747_v38, 1  ;;  %v1951_v50 = vperm.slane %v4747_v38, 2  ;;  %v1989_v51 = vperm.slane %v4747_v38, 3  ;;  %v2134_v52 = vperm.slane %v4747_v38, 7 }
 0x29a   : > { %v2060_v56 = vperm.slane %v4747_v38, 5  ;;  %v2097_v57 = vperm.slane %v4747_v38, 6 }
 0x29b   : > { %v1911_v58 = vsub.f32 %v1908_v44, %v1910_v48  ;;  %v1952_v49 = vsub.f32 %v1949_v31, %v1951_v50  ;;  %v1990_v60 = vsub.f32 %v1987_v43, %v1989_v51  ;;  %v2135_v12 = vsub.f32 %v2132_v46, %v2134_v52 }
 0x29c   : > { %v2061_v62 = vsub.f32 %v2058_v53, %v2060_v56  ;;  %v2098_v26 = vsub.f32 %v2095_v54, %v2097_v57  ;;  %v1877_v52 = vperm.slane %v4747_v38, 0  ;;  %v4797_v57 = vpop.f32.mrf.mxu2 }
 0x29d   : > { %v1991_v4 = vadd.f32 %v1990_v60, %v4745_v47  ;;  %v1912_v6 = vadd.f32 %v1911_v58, %v4745_v47  ;;  %v1953_v61 = vadd.f32 %v1952_v49, %v4745_v47  ;;  %v4761_v63 = vadd.f32 %v2135_v12, %v4745_v47 }
 0x29e   : > { %v2062_v7 = vadd.f32 %v2061_v62, %v4745_v47  ;;  %v4766_v18 = vadd.f32 %v2098_v26, %v4745_v47 }
 0x29f   : > { %v1992_v36 = vmul.f32 1.442695, %v1991_v4  ;;  %v1913_v39 = vmul.f32 1.442695, %v1912_v6  ;;  %v1954_v51 = vmul.f32 1.442695, %v1953_v61 }
 0x2a0   : > { %v1684_v8 = vpop.f32.mrf.mxu3  ;;  %v2063_v48 = vmul.f32 1.442695, %v2062_v7  ;;  %v2137_v33 = vmul.f32 1.442695, %v4761_v63  ;;  %v4049_v61 = vmov 0.0|0.0  }
 0x2a1   : > { %v1701_v10 = vmul.f32 %v1697_v29, %v1684_v8  ;;  %3572 = vpow2.f32 %v1992_v36  ;;  %v2100_v63 = vmul.f32 1.442695, %v4766_v18 }
 0x2a2   : > { %3574 = vpow2.f32 %v1913_v39 }
 0x2a3   : > { %v1702_v11 = vpack.c.bf16 %v1701_v10, %v4769_v30  ;;  %3576 = vpow2.f32 %v2063_v48 }
 0x2a4   : > { %3578 = vpow2.f32 %v1954_v51  ;;  %v1772_v29 = vpop.f32.mrf.mxu2 }
 0x2a5   : > { %v2034_v2 = vunpack.c.h.b16 %v1702_v11  ;;  %v1889_v14 = vsel %vm1887_vm3, %v1702_v11, 0  ;;  %v1918_v15 = vunpack.c.l.b16 %v1702_v11 }
 0x2a6   : > { %1898 = vmatpush.bf16.msra.mxu3 %v1889_v14 }
 0x2a7   : > { %v2035_v45 = vpack.c.b16 %v2034_v2, %v2034_v2  ;;  %v1919_v16 = vpack.c.b16 %v1918_v15, %v1918_v15  ;;  %v3573_v40 = vpop.eup %3572 }
 0x2a8   : > { %v4773_v19 = vpop.f32.mrf.mxu3 }
 0x2a9   : > { %1958 = vrot.lane.b32.xlu1 %v1919_v16, %s4038_s17  ;;  %1996 = vrot.lane.b32.xlu2 %v1919_v16, %s4046_s14  ;;  %v2040_v20 = vsel %vm1887_vm3, %v2035_v45, 0 }
 0x2aa   : > { %2049 = vmatpush.bf16.msrb.mxu3 %v2040_v20 }
 0x2b0   : > { %v1792_v21 = vpop.f32.mrf.mxu3 }
 0x2b1   : > { %v4778_v22 = vmul.f32 %v1792_v21, %v1701_v10  ;;  %2141 = vrot.lane.b32.xlu1 %v2035_v45, %s4046_s14  ;;  %1920 = vrot.lane.b32.xlu2 %v1919_v16, %s4047_s4  ;;  %v2027_v10 = vperm.slane %v4747_v38, 4  ;;  %v2265_v16 = vmul.f32 %v1772_v29, %v4769_v30 }
 0x2b3   : > { %v2268_v7 = vpack.c.bf16 %v4778_v22, %v4778_v22 }
 0x2b5   : > { %v2302_v20 = vsel %vm1887_vm3, %v2268_v7, 0 }
 0x2b9   : > { %2104 = vrot.lane.b32.xlu1 %v2035_v45, %s4038_s17  ;;  %1874 = vperm.xlu2 %3533, %v4612_v13  }
 0x2c1   : > { %2067 = vrot.lane.b32.xlu2 %v2035_v45, %s4047_s4 }
 0x2c2   : > { %3534 = vset.pattern.permute.xlu2 %v4048_v23 }
 0x2c3   : > { %v1817_v32 = vpop.f32.mrf.mxu0 }
 0x2c4   : > { %v2267_v32 = vpack.c.bf16 %v2265_v16, %v2265_v16 }
 0x2c6   : > { %v2299_v36 = vsel %vm1887_vm3, %v2267_v32, 0 }
 0x2c9   : > { %2024 = vperm.xlu2 %3534, %v4612_v13   ;;  %v3575_v13 = vpop.eup %3574 }
 0x2ca   : > { %v3577_v56 = vpop.eup %3576 }
 0x2cb   : > { %v1837_v35 = vpop.f32.mrf.mxu0  ;;  %v3579_v49 = vpop.eup %3578 }
 0x2d4   : > { %v4786_v25 = vpop.f32.mrf.mxu3 }
 0x2d5   : > { %v1994_v41 = vmul.f32 %v3573_v40, %v4786_v25  ;;  %v1915_v46 = vmul.f32 %v3575_v13, %v4786_v25  ;;  %v1956_v60 = vmul.f32 %v3579_v49, %v4786_v25  ;;  %v2065_v12 = vmul.f32 %v3577_v56, %v4786_v25 }
 0x2d7   : > { %v1995_v31 = vpack.c.bf16 %v1994_v41, %v1994_v41  ;;  %v1916_v50 = vpack.c.bf16 %v1915_v46, %v1915_v46  ;;  %v1957_v4 = vpack.c.bf16 %v1956_v60, %v1956_v60  ;;  %v2066_v6 = vpack.c.bf16 %v2065_v12, %v2065_v12 }
 0x2d8   : > { %v3175_v60 = vmul.f32 -1.442695, %v4535_v59  ;;  %v3174_v12 = vmul.f32 -1.442695, %v4545_v5 }
 0x2dc   : > { %v1869_v34 = vpop.f32.mrf.mxu3 }
 0x303   : > { %v1997_v43 = vpop.permute.xlu2 %1996 }
 0x304   : > { %v2002_v44 = vsel %vm1887_vm3, %v1997_v43, 0 }
 0x305   : > { %2011 = vmatpush.bf16.msrb.mxu2 %v2002_v44 }
 0x308   : > { %3159 = vmatmul.msk.bf16.vlgmr.msrb.gmra.mxu2 %vm1558_vm0, %v1995_v31 }
 0x30b   : > { %v1921_v17 = vpop.permute.xlu2 %1920 }
 0x30c   : > { %v1926_v37 = vsel %vm1887_vm3, %v1921_v17, 0 }
 0x30d   : > { %1935 = vmatpush.bf16.msra.mxu0 %v1926_v37 }
 0x310   : > { %3157 = vmatmul.msk.bf16.vlgmr.msra.gmra.mxu0 %vm1558_vm0, %v1916_v50 }
 0x313   : > { %v1875_v53 = vpop.permute.xlu2 %1874 }
 0x314   : > { %v1878_v54 = vsub.f32 %v1875_v53, %v1877_v52 }
 0x316   : > { %v1879_v55 = vadd.f32 %v1878_v54, %v4745_v47 }
 0x318   : > { %v1880_v58 = vmul.f32 1.442695, %v1879_v55 }
 0x31a   : > { %3580 = vpow2.f32 %v1880_v58 }
 0x31b   : > { %v1959_v62 = vpop.permute.xlu1 %1958  ;;  %v2068_v26 = vpop.permute.xlu2 %2067  ;;  %3582 = vpow2.f32 %v2137_v33 }
 0x31c   : > { %v1964_v0 = vsel %vm1887_vm3, %v1959_v62, 0  ;;  %v2073_v1 = vsel %vm1887_vm3, %v2068_v26, 0  ;;  %3584 = vpow2.f32 %v2100_v63 }
 0x31d   : > { %1973 = vmatpush.bf16.msra.mxu1 %v1964_v0  ;;  %2082 = vmatpush.bf16.msrb.mxu0 %v2073_v1 }
 0x320   : > { %v3581_v42 = vpop.eup %3580  ;;  %3158 = vmatmul.msk.bf16.vlgmr.msra.gmra.mxu1 %vm1558_vm0, %v1957_v4  ;;  %3161 = vmatmul.msk.bf16.vlgmr.msrb.gmra.mxu0 %vm1558_vm0, %v2066_v6 }
 0x321   : > { %2211 = vmatpush.bf16.msra.mxu0 %v4049_v61  ;;  %v3583_v27 = vpop.eup %3582  ;;  %v1882_v8 = vmul.f32 %v3581_v42, %v4786_v25 }
 0x322   : > { %v2139_v11 = vmul.f32 %v3583_v27, %v4786_v25  ;;  %v3585_v23 = vpop.eup %3584 }
 0x323   : > { %v1883_v2 = vpack.c.bf16 %v1882_v8, %v1882_v8  ;;  %v2142_v14 = vpop.permute.xlu1 %2141  ;;  %v2025_v18 = vpop.permute.xlu2 %2024  ;;  %v2102_v34 = vmul.f32 %v3585_v23, %v4786_v25 }
 0x324   : > { %v2147_v15 = vsel %vm1887_vm3, %v2142_v14, 0  ;;  %v2028_v45 = vsub.f32 %v2025_v18, %v2027_v10  ;;  %v2140_v38 = vpack.c.bf16 %v2139_v11, %v2139_v11 }
 0x325   : > { %3156 = vmatmul.msk.bf16.vlgmr.msra.gmra.mxu3 %vm1558_vm0, %v1883_v2  ;;  %2156 = vmatpush.bf16.msra.mxu2 %v2147_v15  ;;  %v2103_v39 = vpack.c.bf16 %v2102_v34, %v2102_v34 }
 0x326   : > { %v2029_v21 = vadd.f32 %v2028_v45, %v4745_v47  ;;  %2198 = vmatpush.bf16.msra.mxu3 %v4049_v61 }
 0x328   : > { %v2030_v22 = vmul.f32 1.442695, %v2029_v21  ;;  %3163 = vmatmul.msk.bf16.vlgmr.msra.gmra.mxu2 %vm1558_vm0, %v2140_v38 }
 0x329   : > { %2340 = vmatpush.bf16.msrb.mxu2 %v2302_v20 }
 0x32a   : > { %3586 = vpow2.f32 %v2030_v22 }
 0x32b   : > { %v2105_v35 = vpop.permute.xlu1 %2104  ;;  %3588 = vpow2.f32 %v3175_v60 }
 0x32c   : > { %v2110_v30 = vsel %vm1887_vm3, %v2105_v35, 0  ;;  %3590 = vpow2.f32 %v3174_v12  ;;  %v3296_v12 = vld [vmem:[%s4417_s7 + $0x8] sm:$0xff] }
 0x32d   : > { %2119 = vmatpush.bf16.msrb.mxu1 %v2110_v30 }
 0x330   : > { %v3587_v47 = vpop.eup %3586  ;;  %3162 = vmatmul.msk.bf16.vlgmr.msrb.gmra.mxu1 %vm1558_vm0, %v2103_v39  ;;  %3165 = vmatmul.msk.bf16.vlgmr.msra.gmra.mxu0 %vm1851_vm14, %v4729_v3 }
 0x331   : > { %2311 = vmatpush.bf16.msra.mxu1 %v2299_v36  ;;  %v2032_v40 = vmul.f32 %v3587_v47, %v4786_v25  ;;  %v3589_v62 = vpop.eup %3588 }
 0x332   : > { %v2401_v0 = vadd.f32 1.0, %v3589_v62  ;;  %v3591_v1 = vpop.eup %3590  ;;  %v3304_v62 = vld [vmem:[%s4417_s7 + $0x48] sm:$0xff] }
 0x333   : > { %v2033_v41 = vpack.c.bf16 %v2032_v40, %v2032_v40  ;;  %v2400_v4 = vadd.f32 1.0, %v3591_v1  ;;  %v3295_v1 = vld [vmem:[%s4417_s7] sm:$0xff] }
 0x334   : > { %3592 = vrcp.f32 %v2401_v0  ;;  %vm2422_vm7 = vweird.f32 %v2401_v0  ;;  %v2428_v11 = vand.u32 2147483648, %v2401_v0  ;;  %v2426_v18 = vand.u32 2147483647, %v2401_v0 }
 0x335   : > { %3160 = vmatmul.msk.bf16.vlgmr.msrb.gmra.mxu3 %vm1558_vm0, %v2033_v41  ;;  %3594 = vrcp.f32 %v2400_v4  ;;  %vm2407_vm11 = vweird.f32 %v2400_v4  ;;  %v2413_v20 = vand.u32 2147483648, %v2400_v4  ;;  %v2411_v32 = vand.u32 2147483647, %v2400_v4 }
 0x336   : > { %v2429_v15 = vor.u32 1.1754944e-38, %v2428_v11  ;;  %vm2427_vm10 = vcmp.eq.f32.partialorder %v2426_v18, 8.507059e+37 }
 0x337   : > { %v2414_v36 = vor.u32 1.1754944e-38, %v2413_v20  ;;  %vm2412_vm15 = vcmp.eq.f32.partialorder %v2411_v32, 8.507059e+37 }
 0x33a   : > { %v3593_v61 = vpop.eup %3592 }
 0x33b   : > { %v2418_v63 = vmul.f32 %v3593_v61, %v2401_v0  ;;  %v3595_v42 = vpop.eup %3594  ;;  %vm2423_vm8 = vweird.f32 %v3593_v61 }
 0x33c   : > { %v2403_v7 = vmul.f32 %v3595_v42, %v2400_v4  ;;  %vm2424_vm9 = vmor %vm2422_vm7, %vm2423_vm8  ;;  %vm2408_vm12 = vweird.f32 %v3595_v42  ;;  %v3303_v4 = vld [vmem:[%s4417_s7 + $0x40] sm:$0xff] }
 0x33d   : > { %v2419_v27 = vsub.f32 1.0, %v2418_v63  ;;  %vm2409_vm13 = vmor %vm2407_vm11, %vm2408_vm12 }
 0x33e   : > { %v2404_v2 = vsub.f32 1.0, %v2403_v7 }
 0x33f   : > { %v2420_v8 = vmul.f32 %v3593_v61, %v2419_v27 }
 0x340   : > { %v2405_v45 = vmul.f32 %v3595_v42, %v2404_v2 }
 0x341   : > { %v2421_v14 = vadd.f32 %v3593_v61, %v2420_v8 }
 0x342   : > { %v2406_v23 = vadd.f32 %v3595_v42, %v2405_v45 }
 0x343   : > { %v2425_v16 = vsel %vm2424_vm9, %v3593_v61, %v2421_v14 }
 0x344   : > { %v2430_v22 = vsel %vm2427_vm10, %v2429_v15, %v2425_v16  ;;  %v2410_v47 = vsel %vm2409_vm13, %v3595_v42, %v2406_v23 }
 0x345   : > { %3164 = vmatmul.msk.bf16.vlgmr.msra.gmra.mxu3 %vm1851_vm14, %v4729_v3  ;;  %vm1945_vm14 = vcmask 523520   ;;  %v2433_v30 = vmul.f32 %v2430_v22, %v4535_v59  ;;  %v2415_v41 = vsel %vm2412_vm15, %v2414_v36, %v2410_v47 }
 0x38b   : > { %v2013_v43 = vpop.f32.mrf.mxu2 }
 0x38d   : > { %v1937_v44 = vpop.f32.mrf.mxu0 }
 0x38e   : > { %1942 = vrot.lane.b32.xlu1 %v1937_v44, %s4046_s14 }
 0x393   : > { %v2015_v31 = vpop.f32.mrf.mxu2 }
 0x394   : > { %v2432_v31 = vmul.f32 %v2415_v41, %v4545_v5  ;;  %v4050_v5 = vmov 256.0  }
 0x395   : > { %v1939_v13 = vpop.f32.mrf.mxu0  ;;  %3596 = vrcp.f32 %v4050_v5 }
 0x39d   : > { %v1975_v46 = vpop.f32.mrf.mxu1  ;;  %v2084_v17 = vpop.f32.mrf.mxu0 }
 0x39e   : > { %1980 = vrot.lane.b32.xlu1 %v1975_v46, %s4038_s17  ;;  %2089 = vrot.lane.b32.xlu2 %v2084_v17, %s4046_s14  ;;  %v3302_v17 = vld [vmem:[%s4417_s7 + $0x38] sm:$0xff] }
 0x39f   : > { %2600 = vmatpush.bf16.msrb.mxu3 %v3302_v17 }
 0x3a5   : > { %v1977_v37 = vpop.f32.mrf.mxu1  ;;  %v2086_v25 = vpop.f32.mrf.mxu0 }
 0x3a6   : > { %2018 = vrot.lane.b32.xlu1 %v2013_v43, %s4047_s4  ;;  %v3310_v37 = vld [vmem:[%s4417_s7 + $0x78] sm:$0xff]  ;;  %v3309_v25 = vld [vmem:[%s4417_s7 + $0x70] sm:$0xff] }
 0x3a7   : > { %2613 = vmatpush.bf16.msrb.mxu0 %v3310_v37 }
 0x3a8   : > { %v1900_v48 = vpop.f32.mrf.mxu3 }
 0x3a9   : > { %1905 = vst.msk [vmem:[#allocation4] sm:$0xff] %vm1904_vm4, %v1900_v48 }
 0x3ab   : > { %v2158_v3 = vpop.f32.mrf.mxu2  ;;  %2614 = vmatpush.bf16.msrb.mxu0 %v3309_v25 }
 0x3ad   : > { %v2121_v50 = vpop.f32.mrf.mxu1  ;;  %v2213_v51 = vpop.f32.mrf.mxu0 }
 0x3ae   : > { %2126 = vrot.lane.b32.xlu2 %v2121_v50, %s4038_s17  ;;  %v2220_v21 = vmul.f32 %v2213_v51, %v4773_v19  ;;  %v3308_v50 = vld [vmem:[%s4417_s7 + $0x68] sm:$0xff]  ;;  %v3597_v51 = vpop.eup %3596  ;;  %s2645_s17 = scalar_lea.hbm %s5065_s12, %s3243_s10 }
 0x3af   : > { %2615 = vmatpush.bf16.msrb.mxu0 %v3308_v50  ;;  %vm2446_vm1 = vweird.f32 %v3597_v51  ;;  %s2649_s26 = sshll.u32 %s2645_s17, 4  ;;  %s2650_s26 = int_to_ptr.hbm [resolvable:$true] %s2649_s26 }
 0x3b0   : > { %v1902_v52 = vpop.f32.mrf.mxu3  ;;  %s3855_s5 = sshra.s32 %s2650_s26, 4  ;;  %s3856_s5 = int_to_ptr.hbm [resolvable:$true] %s3855_s5 }
 0x3b1   : > { %v3299_v52 = vld [vmem:[%s4417_s7 + $0x20] sm:$0xff]  ;;  %s3857_s14 = scalar_lea.hbm %s3856_s5, 8  ;;  %p3862_p7 = scmp.lt.s32.totalorder %s3856_s5, %s5065_s12 }
 0x3b2   : > { %p3858_p1 = scmp.ne.s32.totalorder %s3856_s5, %s3857_s14  ;;  %p3863_p9 = scmp.lt.s32.totalorder %s3861_s6, %s3857_s14 }
 0x3b3   : > { %v2160_v53 = vpop.f32.mrf.mxu2 }
 0x3b4   : > { %v3307_v53 = vld [vmem:[%s4417_s7 + $0x60] sm:$0xff]  ;;  %p3859_p3 = pnand %p3858_p1, %p4329_p6  ;;  %p3864_p11 = por %p3863_p9, %p3862_p7 }
 0x3b5   : > { %v2123_v54 = vpop.f32.mrf.mxu1  ;;  %v2215_v55 = vpop.f32.mrf.mxu0  ;;  %2616 = vmatpush.bf16.msrb.mxu0 %v3307_v53 }
 0x3b6   : > { %2163 = vrot.lane.b32.xlu2 %v2158_v3, %s4047_s4  ;;  %v3300_v3 = vld [vmem:[%s4417_s7 + $0x28] sm:$0xff]  ;;  %v2442_v54 = vmul.f32 256.0, %v3597_v51  ;;  %v3298_v55 = vld [vmem:[%s4417_s7 + $0x18] sm:$0xff]  ;;  %p3860_p13 = pneg %p3859_p3 }
 0x3b8   : > { %v2051_v33 = vpop.f32.mrf.mxu3  ;;  %p3865_p12 = pnand %p3864_p11, %p3860_p13 }
 0x3b9   : > { %2055 = vst.msk [vmem:[#allocation4 + $0x8] sm:$0xff] %vm1904_vm4, %v2051_v33  ;;  %v3306_v33 = vld [vmem:[%s4417_s7 + $0x58] sm:$0xff] }
 0x3ba   : > { %2617 = vmatpush.bf16.msrb.mxu0 %v3306_v33 }
 0x3c0   : > { %v2053_v56 = vpop.f32.mrf.mxu3 }
 0x3c1   : > { %v2443_v56 = vsub.f32 1.0, %v2442_v54 }
 0x3c3   : > { %v2444_v60 = vmul.f32 %v3597_v51, %v2443_v56 }
 0x3c5   : > { %v2445_v0 = vadd.f32 %v3597_v51, %v2444_v60 }
 0x3c8   : > { %v2200_v58 = vpop.f32.mrf.mxu3 }
 0x3c9   : > { %v2219_v19 = vmul.f32 %v2200_v58, %v4797_v57  ;;  %v3297_v58 = vld [vmem:[%s4417_s7 + $0x10] sm:$0xff] }
 0x3d0   : > { %v2202_v49 = vpop.f32.mrf.mxu3 }
 0x3d1   : > { %v3305_v49 = vld [vmem:[%s4417_s7 + $0x50] sm:$0xff] }
 0x3d2   : > { %2618 = vmatpush.bf16.msrb.mxu0 %v3305_v49 }
 0x3d6   : > { %2619 = vmatpush.bf16.msrb.mxu0 %v3304_v62 }
 0x3da   : > { %2620 = vmatpush.bf16.msrb.mxu0 %v3303_v4 }
 0x3db   : > { %2270 = vxpose.xlu1.c.b16.start.end [1/1] (short) (narrow) %v4603_v9, 64 }
 0x3f8   : > { %v2090_v26 = vpop.permute.xlu2 %2089 }
 0x3f9   : > { %2092 = vst.msk [vmem:[#allocation4 + $0x8] sm:$0xff] %vm1945_vm14, %v2090_v26 }
 0x400   : > { %v1943_v6 = vpop.permute.xlu1 %1942 }
 0x401   : > { %1946 = vst.msk [vmem:[#allocation4] sm:$0xff] %vm1945_vm14, %v1943_v6  ;;  %v2447_v6 = vsel %vm2446_vm1, %v3597_v51, %v2445_v0 }
 0x408   : > { %v2127_v9 = vpop.permute.xlu2 %2126 }
 0x409   : > { %2129 = vst.msk [vmem:[#allocation4 + $0x8] sm:$0xff] %vm1983_vm5, %v2127_v9 }
 0x410   : > { %v1981_v29 = vpop.permute.xlu1 %1980  ;;  %v2164_v10 = vpop.permute.xlu2 %2163 }
 0x411   : > { %1984 = vst.msk [vmem:[#allocation4] sm:$0xff] %vm1983_vm5, %v1981_v29 }
 0x412   : > { %2166 = vst.msk [vmem:[#allocation4 + $0x8] sm:$0xff] %vm2021_vm6, %v2164_v10 }
 0x418   : > { %v2019_v38 = vpop.permute.xlu1 %2018 }
 0x419   : > { %2022 = vst.msk [vmem:[#allocation4] sm:$0xff] %vm2021_vm6, %v2019_v38  ;;  %v2218_v34 = vld [vmem:[#allocation4 + $0x8] sm:$0xff] }
 0x41a   : > { %v2222_v35 = vadd.f32 %v2220_v21, %v2218_v34 }
 0x41c   : > { %v2246_v39 = vadd.f32 %v4742_v28, %v2222_v35 }
 0x41e   : > { %v4841_v40 = vmul.f32 %v2433_v30, %v2246_v39 }
 0x420   : > { %v2217_v43 = vld [vmem:[#allocation4] sm:$0xff]  ;;  %v2437_v46 = vmul.f32 %v4841_v40, %v4841_v40 }
 0x421   : > { %v2221_v44 = vadd.f32 %v2219_v19, %v2217_v43 }
 0x423   : > { %v2245_v59 = vadd.f32 %v4735_v24, %v2221_v44  ;;  %v3301_v24 = vld [vmem:[%s4417_s7 + $0x30] sm:$0xff]  ;;  %s782_s7 = scalar_lea.vmem %s5062_s23, %s2944_s11  ;;  %s764_s11 = scalar_lea.vmem [#allocation18], %s2943_s27 }
 0x424   : > { %2601 = vmatpush.bf16.msrb.mxu3 %v3301_v24  ;;  %v2462_v11 = vld [vmem:[%s782_s7] sm:$0x3]  ;;  %s2647_s29 = sshll.u32 %s764_s11, 4  ;;  %s2648_s29 = int_to_ptr.vmem [resolvable:$true] %s2647_s29 }
 0x425   : > { %v4846_v13 = vmul.f32 %v2432_v31, %v2245_v59  ;;  %v2464_v14 = vperm.slane %v2462_v11, 0  ;;  %v2465_v18 = vperm.slane %v2462_v11, 1 }
 0x427   : > { %v2436_v28 = vmul.f32 %v4846_v13, %v4846_v13 }
 0x428   : > { %2602 = vmatpush.bf16.msrb.mxu3 %v3300_v3 }
 0x429   : > { %v2438_v57 = vadd.f32 %v2437_v46, %v2436_v28 }
 0x42b   : > { %2439 = vadd.xlane.f32.xlu2 %v2438_v57  ;;  %v3600_v57 = vld [vmem:[%s615_s15] sm:$0xff] }
 0x42c   : > { %2603 = vmatpush.bf16.msrb.mxu3 %v3299_v52 }
 0x430   : > { %2604 = vmatpush.bf16.msrb.mxu3 %v3298_v55 }
 0x434   : > { %2605 = vmatpush.bf16.msrb.mxu3 %v3297_v58 }
 0x438   : > { %2606 = vmatpush.bf16.msrb.mxu3 %v3296_v12 }
 0x43c   : > { %2607 = vmatpush.bf16.msrb.mxu3 %v3295_v1 }
 0x487   : > { %v2278_v48 = vpop.trf.xlu1 }
 0x488   : > { %3166 = vmatmul.msk.bf16.vlgmr.msra.gmra.mxu1 %vm1558_vm0, %v2278_v48  ;;  %3170 = vmatmul.msk.bf16.vlgmr.msrb.gmra.mxu2 %vm1558_vm0, %v2278_v48 }
 0x497   : > { %v2279_v26 = vpop.trf.xlu1 }
 0x498   : > { %3167 = vmatmul.msk.bf16.gmra.mxu1 %vm1558_vm0, %v2279_v26  ;;  %3171 = vmatmul.msk.bf16.gmra.mxu2 %vm1558_vm0, %v2279_v26 }
 0x49e   : > { %v2440_v61 = vpop.xlane.xlu2 %2439 }
 0x49f   : > { %v2448_v63 = vmul.f32 %v2447_v6, %v2440_v61 }
 0x4a1   : > { %v2449_v9 = vadd.f32 1e-05, %v2448_v63 }
 0x4a3   : > { %3598 = vrsqrt.f32 %v2449_v9  ;;  %vm2456_vm3 = vweird.f32 %v2449_v9 }
 0x4a7   : > { %v2280_v42 = vpop.trf.xlu1 }
 0x4a8   : > { %3168 = vmatmul.msk.bf16.gmra.mxu1 %vm1558_vm0, %v2280_v42  ;;  %3172 = vmatmul.msk.bf16.gmra.mxu2 %vm1558_vm0, %v2280_v42 }
 0x4a9   : > { %v3599_v27 = vpop.eup %3598 }
 0x4aa   : > { %v2451_v7 = vmul.f32 %v3599_v27, %v2449_v9  ;;  %vm2457_vm2 = vweird.f32 %v3599_v27 }
 0x4ab   : > { %vm2458_vm4 = vmor %vm2456_vm3, %vm2457_vm2 }
 0x4ac   : > { %v2452_v8 = vmul.f32 %v3599_v27, %v2451_v7 }
 0x4ae   : > { %v2453_v29 = vmul.f32 0.5, %v2452_v8 }
 0x4b0   : > { %v2454_v10 = vsub.f32 1.5, %v2453_v29 }
 0x4b2   : > { %v2455_v2 = vmul.f32 %v3599_v27, %v2454_v10 }
 0x4b4   : > { %v2459_v15 = vsel %vm2458_vm4, %v3599_v27, %v2455_v2 }
 0x4b5   : > { %v2460_v45 = vmul.f32 %v2459_v15, %v4846_v13  ;;  %v2461_v16 = vmul.f32 %v2459_v15, %v4841_v40 }
 0x4b7   : > { %v2468_v20 = vmul.f32 %v2464_v14, %v2460_v45  ;;  %v2469_v21 = vmul.f32 %v2465_v18, %v2461_v16  ;;  %v2281_v38 = vpop.trf.xlu1 }
 0x4b8   : > { %3169 = vmatmul.msk.bf16.gmra.mxu1 %vm1558_vm0, %v2281_v38  ;;  %3173 = vmatmul.msk.bf16.gmra.mxu2 %vm1558_vm0, %v2281_v38 }
 0x4b9   : > { %v2470_v22 = vpack.c.bf16 %v2468_v20, %v2468_v20  ;;  %v2471_v23 = vpack.c.bf16 %v2469_v21, %v2469_v21 }
 0x4bb   : > { %2608 = vmatmul.bf16.vlgmr.msrb.gmra.mxu3 %v2470_v22  ;;  %2621 = vmatmul.bf16.vlgmr.msrb.gmra.mxu0 %v2471_v23 }
 0x505   : > { %v2313_v32 = vpop.f32.mrf.mxu1 }
 0x50b   : > { %v2342_v34 = vpop.f32.mrf.mxu2 }
 0x50d   : > { %v2315_v35 = vpop.f32.mrf.mxu1 }
 0x513   : > { %v2344_v30 = vpop.f32.mrf.mxu2 }
 0x515   : > { %v2318_v36 = vpop.f32.mrf.mxu1 }
 0x51b   : > { %v2347_v39 = vpop.f32.mrf.mxu2 }
 0x51d   : > { %v2320_v47 = vpop.f32.mrf.mxu1 }
 0x523   : > { %v2349_v40 = vpop.f32.mrf.mxu2 }
 0x525   : > { %v2323_v19 = vpop.f32.mrf.mxu1 }
 0x52b   : > { %v2352_v41 = vpop.f32.mrf.mxu2 }
 0x52d   : > { %v2325_v43 = vpop.f32.mrf.mxu1 }
 0x533   : > { %v2354_v44 = vpop.f32.mrf.mxu2 }
 0x535   : > { %v2328_v31 = vpop.f32.mrf.mxu1 }
 0x538   : > { %v2622_v59 = vpop.f32.mrf.mxu0 }
 0x53b   : > { %v2357_v13 = vpop.f32.mrf.mxu2 }
 0x53d   : > { %v2330_v28 = vpop.f32.mrf.mxu1 }
 0x53e   : > { %v2609_v46 = vpop.f32.mrf.mxu3 }
 0x53f   : > { %v2610_v17 = vadd.f32 %v3600_v57, %v2609_v46 }
 0x540   : > { %v2624_v37 = vpop.f32.mrf.mxu0 }
 0x541   : > { %v2623_v5 = vadd.f32 %v2622_v59, %v2610_v17 }
 0x543   : > { %v2359_v24 = vpop.f32.mrf.mxu2  ;;  %2626 = vst [vmem:[%s764_s11] sm:$0xff] %v2623_v5 }
 0x544   : > { %3868 = shalt.err (!%p3865_p12)
}
 0x545   : > { %3336 = dma.vmem_to_hbm [thread:$0]  (%p4329_p6), %s2648_s29, 128, %s2650_s26, %s2628_s1  }
 0x546   : > { %v2611_v25 = vpop.f32.mrf.mxu3 }
 0x547 PF: > { %s5067_s23 = sld [smem:[#allocation26_spill]]  ;;  %p3371_p10 = scmp.ge.s32.totalorder %s4031_s19, 2 }
 0x549   : > { %p3365_p0 = pnand %p3371_p10, %p4269_p5 }
 0x54b   : > { %p3366_p4 = pneg %p3365_p0 }
 0x54d   : > { %s2661_s24 = sand.u32 1, %s5067_s23  }
 0x54e   : > { %s2662_s22 = scalar_lea.sflag [#allocation7], %s2661_s24 }
 0x54f   : > { %3962 = dma.done.wait (%p3366_p4), %s2662_s22, 128  }
 0x550   : > { %3964 = vsyncadd (%p3366_p4), %s2662_s22, 4294967168  ;;  %s35_s19 = sadd.s32 1, %s4031_s19   ;;  %s5070_s21 = sld [smem:[#allocation27_spill]] }
 0x551   : > { %p4906_p2 = scmp.ge.s32.totalorder %s35_s19, 6   ;;  %s5071_s22 = sld [smem:[#allocation28_spill]] }
 0x552   : > { %s5072_s23 = sld [smem:[#allocation41_spill]]  ;;  %s5083_s26 = smov %s5097_s9 }
 0x553   : > { %s5073_s24 = sld [smem:[#allocation30_spill]]  ;;  %s5084_s27 = smov %s3995_s28 }
 0x554   : > { %s5074_s25 = sld [smem:[#allocation31_spill]]  ;;  %s5088_s16 = smov %s4027_s18 }
 0x555   : > { %s5075_s30 = sld [smem:[#allocation32_spill]] }
 0x556   : > { %s5076_s29 = sld [smem:[#allocation40_spill]] }
 0x557   : > { %s5077_s10 = sld [smem:[#allocation33_spill]] }
 0x558   : > { %s5078_s14 = sld [smem:[#allocation39_spill]] }
 0x559   : > { %s5079_s15 = sld [smem:[#allocation36_spill]] }
 0x55a   : > { %s5080_s17 = sld [smem:[#allocation37_spill]] }
 0x55b   : > { %s5081_s2 = sld [smem:[#allocation38_spill]]  ;;  %s5085_s28 = smov %s5075_s30 }
 0x55c   : > { %s5086_s30 = smov %s4007_s13 }
 0x55d   : > { %s5087_s13 = smov %s5077_s10  ;;  %34 = sbr.rel (!%p4906_p2) target bundleno = 31 (0x1f), region = 203 }
 0x561   : > { %s5089_s18 = smov %s5081_s2 }
 0x562   :  { %2668 = vsyncpa [#allocation6], 1 }
 0x563   :  { %2670 = vsyncpa [#allocation6 + $0x1], 1 }
 0x564   :  { %2671 = vsyncpa [#allocation9], 1 }
 0x565   :  { %2673 = vsyncpa [#allocation9 + $0x1], 1 }
 0x566   :  { %2674 = vsyncpa [#allocation12], 1 }
 0x567   :  { %2676 = vsyncpa [#allocation12 + $0x1], 1 }
 0x568   :  { %2677 = vsyncpa [#allocation15], 1 }
 0x569   :  { %2678 = vsyncpa [#allocation7], 1 }
 0x56a   :  { %2680 = vsyncpa [#allocation7 + $0x1], 1 }

</bundles_post_ra>
